<compile_context>
chip_gen: v7x
topology: tpu7x:2x2x1
jax: 0.10.0
libtpu: 0.0.40
codegen_flags: <defaults>
</compile_context>

<pallas_src>
import functools

import numpy as np
import jax
import jax.numpy as jnp
from jax.experimental import pallas as pl
from jax.experimental.pallas import tpu as pltpu

EPS = 1e-5


def fused_kernel(x_ref, colmask_ref, ones_ref, w12_ref, w34_ref, w5678_ref,
                 w9_ref, gb16_ref, gb9_ref, o_ref, *, wp, inv_n):
    # x: (6, Ppad) = [x1pad | x2pad] channel-major; colmask: (72, Ppad);
    # ones: (Ppad, 1) masked ones column (0 on pad lanes);
    # w12: (16, 6) block-diag; w34: (16, 72); w5678: (2, 16, 8); w9: (8, 8);
    # gb16: (4, 2, 16, 1) [gamma, beta] per fused stage; gb9: (2, 8, 1);
    # o: (8, Ppad).
    Ppad = x_ref.shape[1]
    ones_col = ones_ref[...]                      # (Ppad, 1)

    def bn(v, gb):
        # Training-mode BatchNorm over the (valid) pixel lanes of a (C, Ppad)
        # tile.  Single MXU dot computes sum and sum-of-squares at once; pad
        # lanes are excluded because ones_col is zero there.
        c = v.shape[0]
        vcat = jnp.concatenate([v, v * v], axis=0)            # (2C, Ppad)
        s = jnp.dot(vcat, ones_col, preferred_element_type=jnp.float32)
        mu = s[:c] * inv_n                                     # (C, 1)
        var = s[c:] * inv_n - mu * mu
        scale = gb[0] * jax.lax.rsqrt(var + EPS)
        return v * scale + (gb[1] - mu * scale)

    # ---- stage 1: conv1(x1) | conv2(x2) as one block-diagonal (16,6) matmul
    # (conv biases dropped: they cancel under training-mode BN).
    v12 = jnp.dot(w12_ref[...], x_ref[...], preferred_element_type=jnp.float32)
    v12 = bn(v12, gb16_ref[0])
    v3 = v12[:8] + v12[8:]                                     # (8, Ppad)

    # ---- stage 2: conv3 | conv4 (3x3, pad=1): 9 rolled copies + tap mask.
    # For every valid (pixel, tap) pair the rolled read stays inside the true
    # pixel range [0, P); wrapped / cross-boundary lanes are zeroed by colmask.
    shifted = []
    for dy in (-1, 0, 1):
        for dx in (-1, 0, 1):
            s = dy * wp + dx
            if s == 0:
                shifted.append(v3)
            else:
                shifted.append(pltpu.roll(v3, shift=(-s) % Ppad, axis=1))
    col = jnp.concatenate(shifted, axis=0) * colmask_ref[...]  # (72, Ppad)
    v45 = jnp.dot(w34_ref[...], col, preferred_element_type=jnp.float32)
    v45 = bn(v45, gb16_ref[1])
    v6 = v45[:8] + v45[8:]

    # ---- stage 3: conv5 | conv6 (1x1) with sibling weights concatenated
    v78 = jnp.dot(w5678_ref[0], v6, preferred_element_type=jnp.float32)
    v78 = bn(v78, gb16_ref[2])
    v9 = v78[:8] + v78[8:]

    # ---- stage 4: conv7 | conv8
    v1011 = jnp.dot(w5678_ref[1], v9, preferred_element_type=jnp.float32)
    v1011 = bn(v1011, gb16_ref[3])
    v12b = v1011[:8] + v1011[8:]

    # ---- stage 5: conv9 + bn9
    v13 = jnp.dot(w9_ref[...], v12b, preferred_element_type=jnp.float32)
    o_ref[...] = bn(v13, gb9_ref[...])


def _host_masks(N, Hp, Wp, Ppad):
    # Host NumPy constants: (72, Ppad) tap mask matching the im2col row order
    # (tap-major, 8 channels per tap) and a masked ones (Ppad, 1) column.
    P = N * Hp * Wp
    p = np.arange(P)
    x = p % Wp
    y = (p // Wp) % Hp
    rows = []
    for dy in (-1, 0, 1):
        for dx in (-1, 0, 1):
            ok = np.ones((P,), bool)
            if dy == -1:
                ok &= (y >= 1)
            elif dy == 1:
                ok &= (y <= Hp - 2)
            if dx == -1:
                ok &= (x >= 1)
            elif dx == 1:
                ok &= (x <= Wp - 2)
            rows.append(ok)
    tap = np.stack(rows).astype(np.float32)                  # (9, P)
    tap = np.pad(tap, ((0, 0), (0, Ppad - P)))               # zero pad lanes
    colmask = np.repeat(tap, 8, axis=0)                      # (72, Ppad)
    ones_col = np.zeros((Ppad, 1), np.float32)
    ones_col[:P, 0] = 1.0
    return jnp.asarray(colmask), jnp.asarray(ones_col)


def model_forward(x1, x2, p):
    # x1, x2: NCHW float32 (N, 3, H, W).  Returns NCHW (N, 8, H+2, W+2).
    N, C, H, W = x1.shape
    Hp, Wp = H + 2, W + 2
    P = N * Hp * Wp
    Ppad = ((P + 127) // 128) * 128        # lane-dense pixel axis

    def to_cm(x):
        # 1x1 conv with padding=1 -> zero-pad spatially, go channel-major,
        # then pad pixel lanes up to Ppad with zeros.
        xp = jnp.pad(x, ((0, 0), (0, 0), (1, 1), (1, 1)))
        xc = jnp.transpose(xp, (1, 0, 2, 3)).reshape(C, P)
        return jnp.pad(xc, ((0, 0), (0, Ppad - P)))

    xin = jnp.concatenate([to_cm(x1), to_cm(x2)], axis=0)    # (6, Ppad)
    colmask, ones_col = _host_masks(N, Hp, Wp, Ppad)

    vmem = pl.BlockSpec(memory_space=pltpu.MemorySpace.VMEM)
    out2d = pl.pallas_call(
        functools.partial(fused_kernel, wp=Wp, inv_n=1.0 / P),
        out_shape=jax.ShapeDtypeStruct((8, Ppad), jnp.float32),
        in_specs=[vmem] * 9,
        out_specs=vmem,
    )(xin, colmask, ones_col, p["w12"], p["w34"], p["w5678"], p["w9"],
      p["gb16"], p["gb9"])

    return out2d[:, :P].reshape(8, N, Hp, Wp).transpose(1, 0, 2, 3)


def init_raw_params(key):
    keys = jax.random.split(key, 40)
    ki = iter(keys)

    def nrm(shape, scale=0.1):
        return scale * jax.random.normal(next(ki), shape, jnp.float32)

    raw = {}
    raw["w1"], raw["b1"] = nrm((8, 3, 1, 1)), nrm((8,), 0.05)
    raw["w2"], raw["b2"] = nrm((8, 3, 1, 1)), nrm((8,), 0.05)
    raw["w3"], raw["b3"] = nrm((8, 8, 3, 3)), nrm((8,), 0.05)
    raw["w4"], raw["b4"] = nrm((8, 8, 3, 3)), nrm((8,), 0.05)
    for i in range(5, 10):
        raw[f"w{i}"], raw[f"b{i}"] = nrm((8, 8, 1, 1)), nrm((8,), 0.05)
    for i in range(1, 10):
        raw[f"g{i}"] = 1.0 + nrm((8,), 0.1)
        raw[f"be{i}"] = nrm((8,), 0.05)
    return raw


def pack_params(raw):
    # Conv biases are intentionally NOT packed: under training-mode BN a
    # per-channel pre-BN constant cancels exactly, so the kernel omits them.
    def w1x1(w):           # torch (co, ci, 1, 1) -> (co, ci)
        return w[:, :, 0, 0]

    def w3x3(w):           # torch (co, ci, 3, 3) -> (co, 72), cols = (ky, kx, ci)
        return jnp.transpose(w, (0, 2, 3, 1)).reshape(w.shape[0], 9 * w.shape[1])

    z = jnp.zeros((8, 3), jnp.float32)
    w12 = jnp.concatenate([
        jnp.concatenate([w1x1(raw["w1"]), z], axis=1),
        jnp.concatenate([z, w1x1(raw["w2"])], axis=1)], axis=0)          # (16, 6)
    w34 = jnp.concatenate([w3x3(raw["w3"]), w3x3(raw["w4"])], axis=0)    # (16, 72)
    w5678 = jnp.stack([
        jnp.concatenate([w1x1(raw["w5"]), w1x1(raw["w6"])], axis=0),
        jnp.concatenate([w1x1(raw["w7"]), w1x1(raw["w8"])], axis=0)])    # (2, 16, 8)
    w9 = w1x1(raw["w9"])                                                 # (8, 8)

    def cat2(a, b):
        return jnp.concatenate([raw[a], raw[b]])[:, None]                # (16, 1)

    gb16 = jnp.stack([
        jnp.stack([cat2("g1", "g2"), cat2("be1", "be2")]),
        jnp.stack([cat2("g3", "g4"), cat2("be3", "be4")]),
        jnp.stack([cat2("g5", "g6"), cat2("be5", "be6")]),
        jnp.stack([cat2("g7", "g8"), cat2("be7", "be8")])])              # (4, 2, 16, 1)
    gb9 = jnp.stack([raw["g9"][:, None], raw["be9"][:, None]])           # (2, 8, 1)
    return dict(w12=w12, w34=w34, w5678=w5678, w9=w9, gb16=gb16, gb9=gb9)


def ref_forward(x1, x2, p):
    # Pure-JAX reference mirroring the PyTorch forward (NCHW, training-mode BN,
    # conv biases included as in the original module).
    def conv(x, w, b, pad):
        y = jax.lax.conv_general_dilated(
            x, w, window_strides=(1, 1), padding=[(pad, pad), (pad, pad)],
            dimension_numbers=("NCHW", "OIHW", "NCHW"))
        return y + b[None, :, None, None]

    def bn(x, g, be):
        mu = jnp.mean(x, axis=(0, 2, 3), keepdims=True)
        var = jnp.mean((x - mu) ** 2, axis=(0, 2, 3), keepdims=True)
        return ((x - mu) * jax.lax.rsqrt(var + EPS)
                * g[None, :, None, None] + be[None, :, None, None])

    v3 = (bn(conv(x1, p["w1"], p["b1"], 1), p["g1"], p["be1"])
          + bn(conv(x2, p["w2"], p["b2"], 1), p["g2"], p["be2"]))
    v6 = (bn(conv(v3, p["w3"], p["b3"], 1), p["g3"], p["be3"])
          + bn(conv(v3, p["w4"], p["b4"], 1), p["g4"], p["be4"]))
    v9 = (bn(conv(v6, p["w5"], p["b5"], 0), p["g5"], p["be5"])
          + bn(conv(v6, p["w6"], p["b6"], 0), p["g6"], p["be6"]))
    v12 = (bn(conv(v9, p["w7"], p["b7"], 0), p["g7"], p["be7"])
           + bn(conv(v9, p["w8"], p["b8"], 0), p["g8"], p["be8"]))
    return bn(conv(v12, p["w9"], p["b9"], 0), p["g9"], p["be9"])


if __name__ == "__main__":
    key = jax.random.PRNGKey(0)
    kx1, kx2, kp = jax.random.split(key, 3)
    N, C, H, W = 2, 3, 16, 16
    x1 = jax.random.normal(kx1, (N, C, H, W), jnp.float32)
    x2 = jax.random.normal(kx2, (N, C, H, W), jnp.float32)

    raw = init_raw_params(kp)
    packed = pack_params(raw)

    out = jax.jit(model_forward)(x1, x2, packed)
    out = jax.block_until_ready(out)

    ref = ref_forward(x1, x2, raw)
    assert out.shape == (N, 8, H + 2, W + 2), out.shape
    max_err = float(jnp.max(jnp.abs(out - ref)))
    assert max_err < 1e-2, f"max abs error {max_err}"
    print("KERNEL_OK")
</pallas_src>

<mosaic_0001>
module attributes {stable_mosaic.version = 11 : i64} {
  func.func @fused_kernel(%arg0: memref<6x768xf32, #tpu.memory_space<vmem>>, %arg1: memref<72x768xf32, #tpu.memory_space<vmem>>, %arg2: memref<768x1xf32, #tpu.memory_space<vmem>>, %arg3: memref<16x6xf32, #tpu.memory_space<vmem>>, %arg4: memref<16x72xf32, #tpu.memory_space<vmem>>, %arg5: memref<2x16x8xf32, #tpu.memory_space<vmem>>, %arg6: memref<8x8xf32, #tpu.memory_space<vmem>>, %arg7: memref<4x2x16x1xf32, #tpu.memory_space<vmem>>, %arg8: memref<2x8x1xf32, #tpu.memory_space<vmem>>, %arg9: memref<8x768xf32, #tpu.memory_space<vmem>>) attributes {dimension_semantics = [], scalar_prefetch = 0 : i64, scratch_operands = 0 : i64, tpu.core_type = #tpu.core_type<tc>} {
    %c0 = arith.constant 0 : index
    %c0_0 = arith.constant 0 : index
    %0 = vector.load %arg2[%c0, %c0_0] : memref<768x1xf32, #tpu.memory_space<vmem>>, vector<768x1xf32>
    %c0_1 = arith.constant 0 : index
    %c0_2 = arith.constant 0 : index
    %1 = vector.load %arg3[%c0_1, %c0_2] : memref<16x6xf32, #tpu.memory_space<vmem>>, vector<16x6xf32>
    %c0_3 = arith.constant 0 : index
    %c0_4 = arith.constant 0 : index
    %2 = vector.load %arg0[%c0_3, %c0_4] : memref<6x768xf32, #tpu.memory_space<vmem>>, vector<6x768xf32>
    %cst = arith.constant dense<0.000000e+00> : vector<16x768xf32>
    %3 = tpu.matmul %1, %2, %cst {dimension_numbers = #tpu.dot_dimension_numbers<[1], [0], [0], [1], [0, 0, 1, 1], [], []>} : vector<16x6xf32>, vector<6x768xf32>, vector<16x768xf32> -> vector<16x768xf32>
    %c0_5 = arith.constant 0 : index
    %c0_6 = arith.constant 0 : index
    %c0_7 = arith.constant 0 : index
    %c0_8 = arith.constant 0 : index
    %4 = vector.load %arg7[%c0_5, %c0_6, %c0_7, %c0_8] : memref<4x2x16x1xf32, #tpu.memory_space<vmem>>, vector<1x2x16x1xf32>
    %5 = vector.shape_cast %4 : vector<1x2x16x1xf32> to vector<2x16x1xf32>
    %6 = arith.mulf %3, %3 : vector<16x768xf32>
    %7 = tpu.concatenate %3, %6 in 0 : vector<16x768xf32>, vector<16x768xf32> -> vector<32x768xf32>
    %cst_9 = arith.constant dense<0.000000e+00> : vector<32x1xf32>
    %8 = tpu.matmul %7, %0, %cst_9 {dimension_numbers = #tpu.dot_dimension_numbers<[1], [0], [0], [1], [0, 0, 1, 1], [], []>} : vector<32x768xf32>, vector<768x1xf32>, vector<32x1xf32> -> vector<32x1xf32>
    %9 = vector.extract_strided_slice %8 {offsets = [0, 0], sizes = [16, 1], strides = [1, 1]} : vector<32x1xf32> to vector<16x1xf32>
    %cst_10 = arith.constant 0.00154320989 : f32
    %10 = vector.broadcast %cst_10 : f32 to vector<16x1xf32>
    %11 = arith.mulf %9, %10 : vector<16x1xf32>
    %12 = vector.extract_strided_slice %8 {offsets = [16, 0], sizes = [16, 1], strides = [1, 1]} : vector<32x1xf32> to vector<16x1xf32>
    %cst_11 = arith.constant 0.00154320989 : f32
    %13 = vector.broadcast %cst_11 : f32 to vector<16x1xf32>
    %14 = arith.mulf %12, %13 : vector<16x1xf32>
    %15 = arith.mulf %11, %11 : vector<16x1xf32>
    %16 = arith.subf %14, %15 : vector<16x1xf32>
    %17 = vector.extract_strided_slice %5 {offsets = [0, 0, 0], sizes = [1, 16, 1], strides = [1, 1, 1]} : vector<2x16x1xf32> to vector<1x16x1xf32>
    %18 = vector.shape_cast %17 : vector<1x16x1xf32> to vector<16x1xf32>
    %cst_12 = arith.constant 9.99999974E-6 : f32
    %19 = vector.broadcast %cst_12 : f32 to vector<16x1xf32>
    %20 = arith.addf %16, %19 : vector<16x1xf32>
    %21 = math.rsqrt %20 : vector<16x1xf32>
    %22 = arith.mulf %18, %21 : vector<16x1xf32>
    %23 = vector.broadcast %22 : vector<16x1xf32> to vector<16x768xf32>
    %24 = arith.mulf %3, %23 : vector<16x768xf32>
    %25 = vector.extract_strided_slice %5 {offsets = [1, 0, 0], sizes = [1, 16, 1], strides = [1, 1, 1]} : vector<2x16x1xf32> to vector<1x16x1xf32>
    %26 = vector.shape_cast %25 : vector<1x16x1xf32> to vector<16x1xf32>
    %27 = arith.mulf %11, %22 : vector<16x1xf32>
    %28 = arith.subf %26, %27 : vector<16x1xf32>
    %29 = vector.broadcast %28 : vector<16x1xf32> to vector<16x768xf32>
    %30 = arith.addf %24, %29 : vector<16x768xf32>
    %31 = vector.extract_strided_slice %30 {offsets = [0, 0], sizes = [8, 768], strides = [1, 1]} : vector<16x768xf32> to vector<8x768xf32>
    %32 = vector.extract_strided_slice %30 {offsets = [8, 0], sizes = [8, 768], strides = [1, 1]} : vector<16x768xf32> to vector<8x768xf32>
    %33 = arith.addf %31, %32 : vector<8x768xf32>
    %c19_i32 = arith.constant 19 : i32
    %34 = tpu.dynamic_rotate %33 by %c19_i32 dim 1 : vector<8x768xf32>, i32 -> vector<8x768xf32>
    %c18_i32 = arith.constant 18 : i32
    %35 = tpu.dynamic_rotate %33 by %c18_i32 dim 1 : vector<8x768xf32>, i32 -> vector<8x768xf32>
    %c17_i32 = arith.constant 17 : i32
    %36 = tpu.dynamic_rotate %33 by %c17_i32 dim 1 : vector<8x768xf32>, i32 -> vector<8x768xf32>
    %c1_i32 = arith.constant 1 : i32
    %37 = tpu.dynamic_rotate %33 by %c1_i32 dim 1 : vector<8x768xf32>, i32 -> vector<8x768xf32>
    %c767_i32 = arith.constant 767 : i32
    %38 = tpu.dynamic_rotate %33 by %c767_i32 dim 1 : vector<8x768xf32>, i32 -> vector<8x768xf32>
    %c751_i32 = arith.constant 751 : i32
    %39 = tpu.dynamic_rotate %33 by %c751_i32 dim 1 : vector<8x768xf32>, i32 -> vector<8x768xf32>
    %c750_i32 = arith.constant 750 : i32
    %40 = tpu.dynamic_rotate %33 by %c750_i32 dim 1 : vector<8x768xf32>, i32 -> vector<8x768xf32>
    %c749_i32 = arith.constant 749 : i32
    %41 = tpu.dynamic_rotate %33 by %c749_i32 dim 1 : vector<8x768xf32>, i32 -> vector<8x768xf32>
    %42 = tpu.concatenate %34, %35, %36, %37, %33, %38, %39, %40, %41 in 0 : vector<8x768xf32>, vector<8x768xf32>, vector<8x768xf32>, vector<8x768xf32>, vector<8x768xf32>, vector<8x768xf32>, vector<8x768xf32>, vector<8x768xf32>, vector<8x768xf32> -> vector<72x768xf32>
    %c0_13 = arith.constant 0 : index
    %c0_14 = arith.constant 0 : index
    %43 = vector.load %arg1[%c0_13, %c0_14] : memref<72x768xf32, #tpu.memory_space<vmem>>, vector<72x768xf32>
    %44 = arith.mulf %42, %43 : vector<72x768xf32>
    %c0_15 = arith.constant 0 : index
    %c0_16 = arith.constant 0 : index
    %45 = vector.load %arg4[%c0_15, %c0_16] : memref<16x72xf32, #tpu.memory_space<vmem>>, vector<16x72xf32>
    %cst_17 = arith.constant dense<0.000000e+00> : vector<16x768xf32>
    %46 = tpu.matmul %45, %44, %cst_17 {dimension_numbers = #tpu.dot_dimension_numbers<[1], [0], [0], [1], [0, 0, 1, 1], [], []>} : vector<16x72xf32>, vector<72x768xf32>, vector<16x768xf32> -> vector<16x768xf32>
    %c1 = arith.constant 1 : index
    %c0_18 = arith.constant 0 : index
    %c0_19 = arith.constant 0 : index
    %c0_20 = arith.constant 0 : index
    %47 = vector.load %arg7[%c1, %c0_18, %c0_19, %c0_20] : memref<4x2x16x1xf32, #tpu.memory_space<vmem>>, vector<1x2x16x1xf32>
    %48 = vector.shape_cast %47 : vector<1x2x16x1xf32> to vector<2x16x1xf32>
    %49 = arith.mulf %46, %46 : vector<16x768xf32>
    %50 = tpu.concatenate %46, %49 in 0 : vector<16x768xf32>, vector<16x768xf32> -> vector<32x768xf32>
    %cst_21 = arith.constant dense<0.000000e+00> : vector<32x1xf32>
    %51 = tpu.matmul %50, %0, %cst_21 {dimension_numbers = #tpu.dot_dimension_numbers<[1], [0], [0], [1], [0, 0, 1, 1], [], []>} : vector<32x768xf32>, vector<768x1xf32>, vector<32x1xf32> -> vector<32x1xf32>
    %52 = vector.extract_strided_slice %51 {offsets = [0, 0], sizes = [16, 1], strides = [1, 1]} : vector<32x1xf32> to vector<16x1xf32>
    %cst_22 = arith.constant 0.00154320989 : f32
    %53 = vector.broadcast %cst_22 : f32 to vector<16x1xf32>
    %54 = arith.mulf %52, %53 : vector<16x1xf32>
    %55 = vector.extract_strided_slice %51 {offsets = [16, 0], sizes = [16, 1], strides = [1, 1]} : vector<32x1xf32> to vector<16x1xf32>
    %cst_23 = arith.constant 0.00154320989 : f32
    %56 = vector.broadcast %cst_23 : f32 to vector<16x1xf32>
    %57 = arith.mulf %55, %56 : vector<16x1xf32>
    %58 = arith.mulf %54, %54 : vector<16x1xf32>
    %59 = arith.subf %57, %58 : vector<16x1xf32>
    %60 = vector.extract_strided_slice %48 {offsets = [0, 0, 0], sizes = [1, 16, 1], strides = [1, 1, 1]} : vector<2x16x1xf32> to vector<1x16x1xf32>
    %61 = vector.shape_cast %60 : vector<1x16x1xf32> to vector<16x1xf32>
    %cst_24 = arith.constant 9.99999974E-6 : f32
    %62 = vector.broadcast %cst_24 : f32 to vector<16x1xf32>
    %63 = arith.addf %59, %62 : vector<16x1xf32>
    %64 = math.rsqrt %63 : vector<16x1xf32>
    %65 = arith.mulf %61, %64 : vector<16x1xf32>
    %66 = vector.broadcast %65 : vector<16x1xf32> to vector<16x768xf32>
    %67 = arith.mulf %46, %66 : vector<16x768xf32>
    %68 = vector.extract_strided_slice %48 {offsets = [1, 0, 0], sizes = [1, 16, 1], strides = [1, 1, 1]} : vector<2x16x1xf32> to vector<1x16x1xf32>
    %69 = vector.shape_cast %68 : vector<1x16x1xf32> to vector<16x1xf32>
    %70 = arith.mulf %54, %65 : vector<16x1xf32>
    %71 = arith.subf %69, %70 : vector<16x1xf32>
    %72 = vector.broadcast %71 : vector<16x1xf32> to vector<16x768xf32>
    %73 = arith.addf %67, %72 : vector<16x768xf32>
    %74 = vector.extract_strided_slice %73 {offsets = [0, 0], sizes = [8, 768], strides = [1, 1]} : vector<16x768xf32> to vector<8x768xf32>
    %75 = vector.extract_strided_slice %73 {offsets = [8, 0], sizes = [8, 768], strides = [1, 1]} : vector<16x768xf32> to vector<8x768xf32>
    %76 = arith.addf %74, %75 : vector<8x768xf32>
    %c0_25 = arith.constant 0 : index
    %c0_26 = arith.constant 0 : index
    %c0_27 = arith.constant 0 : index
    %77 = vector.load %arg5[%c0_25, %c0_26, %c0_27] : memref<2x16x8xf32, #tpu.memory_space<vmem>>, vector<1x16x8xf32>
    %78 = vector.shape_cast %77 : vector<1x16x8xf32> to vector<16x8xf32>
    %cst_28 = arith.constant dense<0.000000e+00> : vector<16x768xf32>
    %79 = tpu.matmul %78, %76, %cst_28 {dimension_numbers = #tpu.dot_dimension_numbers<[1], [0], [0], [1], [0, 0, 1, 1], [], []>} : vector<16x8xf32>, vector<8x768xf32>, vector<16x768xf32> -> vector<16x768xf32>
    %c2 = arith.constant 2 : index
    %c0_29 = arith.constant 0 : index
    %c0_30 = arith.constant 0 : index
    %c0_31 = arith.constant 0 : index
    %80 = vector.load %arg7[%c2, %c0_29, %c0_30, %c0_31] : memref<4x2x16x1xf32, #tpu.memory_space<vmem>>, vector<1x2x16x1xf32>
    %81 = vector.shape_cast %80 : vector<1x2x16x1xf32> to vector<2x16x1xf32>
    %82 = arith.mulf %79, %79 : vector<16x768xf32>
    %83 = tpu.concatenate %79, %82 in 0 : vector<16x768xf32>, vector<16x768xf32> -> vector<32x768xf32>
    %cst_32 = arith.constant dense<0.000000e+00> : vector<32x1xf32>
    %84 = tpu.matmul %83, %0, %cst_32 {dimension_numbers = #tpu.dot_dimension_numbers<[1], [0], [0], [1], [0, 0, 1, 1], [], []>} : vector<32x768xf32>, vector<768x1xf32>, vector<32x1xf32> -> vector<32x1xf32>
    %85 = vector.extract_strided_slice %84 {offsets = [0, 0], sizes = [16, 1], strides = [1, 1]} : vector<32x1xf32> to vector<16x1xf32>
    %cst_33 = arith.constant 0.00154320989 : f32
    %86 = vector.broadcast %cst_33 : f32 to vector<16x1xf32>
    %87 = arith.mulf %85, %86 : vector<16x1xf32>
    %88 = vector.extract_strided_slice %84 {offsets = [16, 0], sizes = [16, 1], strides = [1, 1]} : vector<32x1xf32> to vector<16x1xf32>
    %cst_34 = arith.constant 0.00154320989 : f32
    %89 = vector.broadcast %cst_34 : f32 to vector<16x1xf32>
    %90 = arith.mulf %88, %89 : vector<16x1xf32>
    %91 = arith.mulf %87, %87 : vector<16x1xf32>
    %92 = arith.subf %90, %91 : vector<16x1xf32>
    %93 = vector.extract_strided_slice %81 {offsets = [0, 0, 0], sizes = [1, 16, 1], strides = [1, 1, 1]} : vector<2x16x1xf32> to vector<1x16x1xf32>
    %94 = vector.shape_cast %93 : vector<1x16x1xf32> to vector<16x1xf32>
    %cst_35 = arith.constant 9.99999974E-6 : f32
    %95 = vector.broadcast %cst_35 : f32 to vector<16x1xf32>
    %96 = arith.addf %92, %95 : vector<16x1xf32>
    %97 = math.rsqrt %96 : vector<16x1xf32>
    %98 = arith.mulf %94, %97 : vector<16x1xf32>
    %99 = vector.broadcast %98 : vector<16x1xf32> to vector<16x768xf32>
    %100 = arith.mulf %79, %99 : vector<16x768xf32>
    %101 = vector.extract_strided_slice %81 {offsets = [1, 0, 0], sizes = [1, 16, 1], strides = [1, 1, 1]} : vector<2x16x1xf32> to vector<1x16x1xf32>
    %102 = vector.shape_cast %101 : vector<1x16x1xf32> to vector<16x1xf32>
    %103 = arith.mulf %87, %98 : vector<16x1xf32>
    %104 = arith.subf %102, %103 : vector<16x1xf32>
    %105 = vector.broadcast %104 : vector<16x1xf32> to vector<16x768xf32>
    %106 = arith.addf %100, %105 : vector<16x768xf32>
    %107 = vector.extract_strided_slice %106 {offsets = [0, 0], sizes = [8, 768], strides = [1, 1]} : vector<16x768xf32> to vector<8x768xf32>
    %108 = vector.extract_strided_slice %106 {offsets = [8, 0], sizes = [8, 768], strides = [1, 1]} : vector<16x768xf32> to vector<8x768xf32>
    %109 = arith.addf %107, %108 : vector<8x768xf32>
    %c1_36 = arith.constant 1 : index
    %c0_37 = arith.constant 0 : index
    %c0_38 = arith.constant 0 : index
    %110 = vector.load %arg5[%c1_36, %c0_37, %c0_38] : memref<2x16x8xf32, #tpu.memory_space<vmem>>, vector<1x16x8xf32>
    %111 = vector.shape_cast %110 : vector<1x16x8xf32> to vector<16x8xf32>
    %cst_39 = arith.constant dense<0.000000e+00> : vector<16x768xf32>
    %112 = tpu.matmul %111, %109, %cst_39 {dimension_numbers = #tpu.dot_dimension_numbers<[1], [0], [0], [1], [0, 0, 1, 1], [], []>} : vector<16x8xf32>, vector<8x768xf32>, vector<16x768xf32> -> vector<16x768xf32>
    %c3 = arith.constant 3 : index
    %c0_40 = arith.constant 0 : index
    %c0_41 = arith.constant 0 : index
    %c0_42 = arith.constant 0 : index
    %113 = vector.load %arg7[%c3, %c0_40, %c0_41, %c0_42] : memref<4x2x16x1xf32, #tpu.memory_space<vmem>>, vector<1x2x16x1xf32>
    %114 = vector.shape_cast %113 : vector<1x2x16x1xf32> to vector<2x16x1xf32>
    %115 = arith.mulf %112, %112 : vector<16x768xf32>
    %116 = tpu.concatenate %112, %115 in 0 : vector<16x768xf32>, vector<16x768xf32> -> vector<32x768xf32>
    %cst_43 = arith.constant dense<0.000000e+00> : vector<32x1xf32>
    %117 = tpu.matmul %116, %0, %cst_43 {dimension_numbers = #tpu.dot_dimension_numbers<[1], [0], [0], [1], [0, 0, 1, 1], [], []>} : vector<32x768xf32>, vector<768x1xf32>, vector<32x1xf32> -> vector<32x1xf32>
    %118 = vector.extract_strided_slice %117 {offsets = [0, 0], sizes = [16, 1], strides = [1, 1]} : vector<32x1xf32> to vector<16x1xf32>
    %cst_44 = arith.constant 0.00154320989 : f32
    %119 = vector.broadcast %cst_44 : f32 to vector<16x1xf32>
    %120 = arith.mulf %118, %119 : vector<16x1xf32>
    %121 = vector.extract_strided_slice %117 {offsets = [16, 0], sizes = [16, 1], strides = [1, 1]} : vector<32x1xf32> to vector<16x1xf32>
    %cst_45 = arith.constant 0.00154320989 : f32
    %122 = vector.broadcast %cst_45 : f32 to vector<16x1xf32>
    %123 = arith.mulf %121, %122 : vector<16x1xf32>
    %124 = arith.mulf %120, %120 : vector<16x1xf32>
    %125 = arith.subf %123, %124 : vector<16x1xf32>
    %126 = vector.extract_strided_slice %114 {offsets = [0, 0, 0], sizes = [1, 16, 1], strides = [1, 1, 1]} : vector<2x16x1xf32> to vector<1x16x1xf32>
    %127 = vector.shape_cast %126 : vector<1x16x1xf32> to vector<16x1xf32>
    %cst_46 = arith.constant 9.99999974E-6 : f32
    %128 = vector.broadcast %cst_46 : f32 to vector<16x1xf32>
    %129 = arith.addf %125, %128 : vector<16x1xf32>
    %130 = math.rsqrt %129 : vector<16x1xf32>
    %131 = arith.mulf %127, %130 : vector<16x1xf32>
    %132 = vector.broadcast %131 : vector<16x1xf32> to vector<16x768xf32>
    %133 = arith.mulf %112, %132 : vector<16x768xf32>
    %134 = vector.extract_strided_slice %114 {offsets = [1, 0, 0], sizes = [1, 16, 1], strides = [1, 1, 1]} : vector<2x16x1xf32> to vector<1x16x1xf32>
    %135 = vector.shape_cast %134 : vector<1x16x1xf32> to vector<16x1xf32>
    %136 = arith.mulf %120, %131 : vector<16x1xf32>
    %137 = arith.subf %135, %136 : vector<16x1xf32>
    %138 = vector.broadcast %137 : vector<16x1xf32> to vector<16x768xf32>
    %139 = arith.addf %133, %138 : vector<16x768xf32>
    %140 = vector.extract_strided_slice %139 {offsets = [0, 0], sizes = [8, 768], strides = [1, 1]} : vector<16x768xf32> to vector<8x768xf32>
    %141 = vector.extract_strided_slice %139 {offsets = [8, 0], sizes = [8, 768], strides = [1, 1]} : vector<16x768xf32> to vector<8x768xf32>
    %142 = arith.addf %140, %141 : vector<8x768xf32>
    %c0_47 = arith.constant 0 : index
    %c0_48 = arith.constant 0 : index
    %143 = vector.load %arg6[%c0_47, %c0_48] : memref<8x8xf32, #tpu.memory_space<vmem>>, vector<8x8xf32>
    %cst_49 = arith.constant dense<0.000000e+00> : vector<8x768xf32>
    %144 = tpu.matmul %143, %142, %cst_49 {dimension_numbers = #tpu.dot_dimension_numbers<[1], [0], [0], [1], [0, 0, 1, 1], [], []>} : vector<8x8xf32>, vector<8x768xf32>, vector<8x768xf32> -> vector<8x768xf32>
    %c0_50 = arith.constant 0 : index
    %c0_51 = arith.constant 0 : index
    %c0_52 = arith.constant 0 : index
    %145 = vector.load %arg8[%c0_50, %c0_51, %c0_52] : memref<2x8x1xf32, #tpu.memory_space<vmem>>, vector<2x8x1xf32>
    %146 = arith.mulf %144, %144 : vector<8x768xf32>
    %147 = tpu.concatenate %144, %146 in 0 : vector<8x768xf32>, vector<8x768xf32> -> vector<16x768xf32>
    %cst_53 = arith.constant dense<0.000000e+00> : vector<16x1xf32>
    %148 = tpu.matmul %147, %0, %cst_53 {dimension_numbers = #tpu.dot_dimension_numbers<[1], [0], [0], [1], [0, 0, 1, 1], [], []>} : vector<16x768xf32>, vector<768x1xf32>, vector<16x1xf32> -> vector<16x1xf32>
    %149 = vector.extract_strided_slice %148 {offsets = [0, 0], sizes = [8, 1], strides = [1, 1]} : vector<16x1xf32> to vector<8x1xf32>
    %cst_54 = arith.constant 0.00154320989 : f32
    %150 = vector.broadcast %cst_54 : f32 to vector<8x1xf32>
    %151 = arith.mulf %149, %150 : vector<8x1xf32>
    %152 = vector.extract_strided_slice %148 {offsets = [8, 0], sizes = [8, 1], strides = [1, 1]} : vector<16x1xf32> to vector<8x1xf32>
    %cst_55 = arith.constant 0.00154320989 : f32
    %153 = vector.broadcast %cst_55 : f32 to vector<8x1xf32>
    %154 = arith.mulf %152, %153 : vector<8x1xf32>
    %155 = arith.mulf %151, %151 : vector<8x1xf32>
    %156 = arith.subf %154, %155 : vector<8x1xf32>
    %157 = vector.extract_strided_slice %145 {offsets = [0, 0, 0], sizes = [1, 8, 1], strides = [1, 1, 1]} : vector<2x8x1xf32> to vector<1x8x1xf32>
    %158 = vector.shape_cast %157 : vector<1x8x1xf32> to vector<8x1xf32>
    %cst_56 = arith.constant 9.99999974E-6 : f32
    %159 = vector.broadcast %cst_56 : f32 to vector<8x1xf32>
    %160 = arith.addf %156, %159 : vector<8x1xf32>
    %161 = math.rsqrt %160 : vector<8x1xf32>
    %162 = arith.mulf %158, %161 : vector<8x1xf32>
    %163 = vector.broadcast %162 : vector<8x1xf32> to vector<8x768xf32>
    %164 = arith.mulf %144, %163 : vector<8x768xf32>
    %165 = vector.extract_strided_slice %145 {offsets = [1, 0, 0], sizes = [1, 8, 1], strides = [1, 1, 1]} : vector<2x8x1xf32> to vector<1x8x1xf32>
    %166 = vector.shape_cast %165 : vector<1x8x1xf32> to vector<8x1xf32>
    %167 = arith.mulf %151, %162 : vector<8x1xf32>
    %168 = arith.subf %166, %167 : vector<8x1xf32>
    %169 = vector.broadcast %168 : vector<8x1xf32> to vector<8x768xf32>
    %170 = arith.addf %164, %169 : vector<8x768xf32>
    %c0_57 = arith.constant 0 : index
    %c0_58 = arith.constant 0 : index
    %171 = vector.load %arg9[%c0_57, %c0_58] : memref<8x768xf32, #tpu.memory_space<vmem>>, vector<8x768xf32>
    tpu.vector_store %arg9[%c0_57, %c0_58], %170 {strides = array<i32>} : memref<8x768xf32, #tpu.memory_space<vmem>>, vector<8x768xf32>,
    return
  }
}

</mosaic_0001>

<bundles_post_ra>
// kernel: model_forward.1
= control target key start
LH: loop header
LB: loop body
LE: loop exit
PB: predicated region body
PF: predicated region fallthrough
CT: control target
= control target key end

     0   :  { %vm143_vm0 = vcmask 1045504   ;;  %v6147_v2 = vmov 0.0   ;;  %vm136_vm1 = vcmask 48128   ;;  %s4476_s17 = smov 19   ;;  %s4477_s18 = smov 18   ;;  %vm996_vm10 = vcmask 588800   ;;  %s6137_s0 = inlined_call_operand.vmem [shape: f32[6,768], index: 0, kind: input, shape index: {}]   ;;  %s6138_s3 = inlined_call_operand.vmem [shape: f32[16,6], index: 3, kind: input, shape index: {}]   ;;  %s6139_s2 = inlined_call_operand.vmem [shape: f32[768,1], index: 2, kind: input, shape index: {}]   ;;  %s6140_s7 = inlined_call_operand.vmem [shape: f32[4,2,16,1], index: 7, kind: input, shape index: {}]   ;;  %s6141_s1 = inlined_call_operand.vmem [shape: f32[72,768], index: 1, kind: input, shape index: {}]   ;;  %s6142_s4 = inlined_call_operand.vmem [shape: f32[16,72], index: 4, kind: input, shape index: {}]   ;;  %s6143_s5 = inlined_call_operand.vmem [shape: f32[2,16,8], index: 5, kind: input, shape index: {}]   ;;  %s6144_s6 = inlined_call_operand.vmem [shape: f32[8,8], index: 6, kind: input, shape index: {}]   ;;  %s6145_s8 = inlined_call_operand.vmem [shape: f32[2,8,1], index: 8, kind: input, shape index: {}]   ;;  %s6146_s9 = inlined_call_operand.vmem [shape: f32[8,768], index: 9, kind: output, shape index: {}]  }
   0x1   :  { %v131_v0 = vld [vmem:[%s6137_s0 + $0x8] sm:$0x3f]  ;;  %v130_v1 = vld [vmem:[%s6137_s0] sm:$0x3f]  ;;  %226 = vmatprep.mubr.f32.mxu0 %v6147_v2  ;;  %232 = vmatprep.mubr.f32.mxu1 %v6147_v2  ;;  %v133_v5 = vld [vmem:[%s6137_s0 + $0x18] sm:$0x3f] }
   0x2   :  { %v128_v3 = vld [vmem:[%s6138_s3] sm:$0xff]  ;;  %3225 = vmatprep.subr.msk.mxu0 %vm143_vm0, %v131_v0  ;;  %4442 = vmatprep.subr.msk.mxu1 %vm143_vm0, %v131_v0  ;;  %v129_v4 = vld [vmem:[%s6138_s3 + $0x8] sm:$0xff]  ;;  %v132_v6 = vld [vmem:[%s6137_s0 + $0x10] sm:$0x3f]  ;;  %s4478_s19 = smov 17   ;;  %s4479_s20 = smov 1  }
   0x3   :  { %3226 = vmatpush1.msk.msra.mxu0 %vm143_vm0, %v130_v1  ;;  %4443 = vmatpush1.msk.msra.mxu1 %vm143_vm0, %v130_v1  ;;  %v135_v7 = vld [vmem:[%s6137_s0 + $0x28] sm:$0x3f]  ;;  %v134_v8 = vld [vmem:[%s6137_s0 + $0x20] sm:$0x3f]  ;;  %v50_v13 = vld [vmem:[%s6139_s2 + $0x90] sm:$0xff]  ;;  %s4480_s21 = smov 127  }
   0x4   :  { %v48_v9 = vld [vmem:[%s6139_s2 + $0x80] sm:$0xff]  ;;  %3227 = vmatmul.mubr.msk.f32.vlgmr.msra.gmra.mrb[0].mxu0 %vm136_vm1, %v128_v3  ;;  %3228 = vmatmul.mubr.msk.f32.vlgmr.msra.gmra.mrb[0].mxu1 %vm136_vm1, %v129_v4  ;;  %v49_v10 = vld [vmem:[%s6139_s2 + $0x88] sm:$0xff]  ;;  %v51_v15 = vld [vmem:[%s6139_s2 + $0x98] sm:$0xff]  ;;  %s4481_s22 = smov 111   ;;  %s4482_s23 = smov 110   ;;  %vm1576_vm11 = vcmask 64512  }
   0x5   :  { %v32_v11 = vld [vmem:[%s6139_s2] sm:$0xff]  ;;  %v33_v12 = vld [vmem:[%s6139_s2 + $0x8] sm:$0xff]  ;;  %3229 = vmatprep.subr.msk.mxu1 %vm143_vm0, %v133_v5  ;;  %303 = vmatprep.mubr.f32.mxu1 %v6147_v2  ;;  %v4585_v14 = vpack.c.bf16 %v49_v10, %v48_v9  ;;  %v34_v19 = vld [vmem:[%s6139_s2 + $0x10] sm:$0xff]  ;;  %v4626_v27 = vpack.c.bf16 %v51_v15, %v50_v13  ;;  %s4483_s24 = smov 109  }
   0x6   :  { %3230 = vmatpush1.msk.msra.mxu1 %vm143_vm0, %v132_v6  ;;  %3233 = vmatprep.subr.msk.mxu0 %vm143_vm0, %v135_v7  ;;  %v80_v16 = vld [vmem:[%s6139_s2 + $0x180] sm:$0xff]  ;;  %v81_v17 = vld [vmem:[%s6139_s2 + $0x188] sm:$0xff]  ;;  %v4598_v18 = vpack.c.bf16 %v33_v12, %v32_v11  ;;  %v35_v23 = vld [vmem:[%s6139_s2 + $0x18] sm:$0xff] }
   0x7   :  { %6234 = vst [vmem:[#allocation2_spill] sm:$0xff] %v4585_v14  ;;  %3234 = vmatpush1.msk.msra.mxu0 %vm143_vm0, %v134_v8  ;;  %380 = vmatprep.mubr.f32.mxu0 %v6147_v2  ;;  %v4603_v20 = vpack.c.bf16 %v81_v17, %v80_v16  ;;  %v64_v21 = vld [vmem:[%s6139_s2 + $0x100] sm:$0xff]  ;;  %v65_v22 = vld [vmem:[%s6139_s2 + $0x108] sm:$0xff]  ;;  %6238 = vst [vmem:[#allocation6_spill] sm:$0xff] %v4626_v27  ;;  %v4645_v33 = vpack.c.bf16 %v35_v23, %v34_v19 }
   0x8   :  { %6235 = vst [vmem:[#allocation3_spill] sm:$0xff] %v4598_v18  ;;  %3231 = vmatmul.mubr.msk.f32.vlgmr.msra.gmra.mrb[2].mxu1 %vm136_vm1, %v128_v3  ;;  %3235 = vmatmul.mubr.msk.f32.vlgmr.msra.gmra.mrb[2].mxu0 %vm136_vm1, %v128_v3  ;;  %v4616_v24 = vpack.c.bf16 %v65_v22, %v64_v21  ;;  %v52_v25 = vld [vmem:[%s6139_s2 + $0xa0] sm:$0xff]  ;;  %v53_v26 = vld [vmem:[%s6139_s2 + $0xa8] sm:$0xff]  ;;  %v82_v28 = vld [vmem:[%s6139_s2 + $0x190] sm:$0xff] }
   0x9   :  { %6236 = vst [vmem:[#allocation4_spill] sm:$0xff] %v4603_v20  ;;  %309 = vmatprep.mubr.f32.mxu1 %v6147_v2  ;;  %386 = vmatprep.mubr.f32.mxu0 %v6147_v2  ;;  %v83_v29 = vld [vmem:[%s6139_s2 + $0x198] sm:$0xff]  ;;  %v66_v30 = vld [vmem:[%s6139_s2 + $0x110] sm:$0xff]  ;;  %6240 = vst [vmem:[#allocation8_spill] sm:$0xff] %v4645_v33  ;;  %v4661_v38 = vpack.c.bf16 %v53_v26, %v52_v25 }
   0xa   :  { %6237 = vst [vmem:[#allocation5_spill] sm:$0xff] %v4616_v24  ;;  %3915 = vmatprep.subr.bf16.mxu1 %v4585_v14  ;;  %3947 = vmatprep.subr.bf16.mxu0 %v4603_v20  ;;  %v4639_v31 = vpack.c.bf16 %v83_v29, %v82_v28  ;;  %v67_v32 = vld [vmem:[%s6139_s2 + $0x118] sm:$0xff]  ;;  %v36_v34 = vld [vmem:[%s6139_s2 + $0x20] sm:$0xff]  ;;  %v37_v35 = vld [vmem:[%s6139_s2 + $0x28] sm:$0xff] }
   0xb   :  { %3917 = vmatpush3.bf16.msra.mxu1 %v4598_v18  ;;  %3949 = vmatpush3.bf16.msra.mxu0 %v4616_v24  ;;  %v4654_v36 = vpack.c.bf16 %v67_v32, %v66_v30  ;;  %v84_v37 = vld [vmem:[%s6139_s2 + $0x1a0] sm:$0xff]  ;;  %6242 = vst [vmem:[#allocation10_spill] sm:$0xff] %v4661_v38  ;;  %v85_v39 = vld [vmem:[%s6139_s2 + $0x1a8] sm:$0xff]  ;;  %v54_v42 = vld [vmem:[%s6139_s2 + $0xb0] sm:$0xff]  ;;  %v4689_v47 = vpack.c.bf16 %v37_v35, %v36_v34 }
   0xc   :  { %6239 = vst [vmem:[#allocation7_spill] sm:$0xff] %v4639_v31  ;;  %3232 = vmatmul.mubr.msk.f32.gmra.mrb[4].mxu1 %vm136_vm1, %v129_v4  ;;  %3236 = vmatmul.mubr.msk.f32.gmra.mrb[4].mxu0 %vm136_vm1, %v129_v4  ;;  %v68_v40 = vld [vmem:[%s6139_s2 + $0x120] sm:$0xff]  ;;  %v69_v41 = vld [vmem:[%s6139_s2 + $0x128] sm:$0xff]  ;;  %v55_v43 = vld [vmem:[%s6139_s2 + $0xb8] sm:$0xff]  ;;  %v4680_v44 = vpack.c.bf16 %v85_v39, %v84_v37 }
   0xd   :  { %6241 = vst [vmem:[#allocation9_spill] sm:$0xff] %v4654_v36  ;;  %3919 = vmatprep.subr.bf16.mxu1 %v4626_v27  ;;  %3951 = vmatprep.subr.bf16.mxu0 %v4639_v31  ;;  %v86_v45 = vld [vmem:[%s6139_s2 + $0x1b0] sm:$0xff]  ;;  %v87_v46 = vld [vmem:[%s6139_s2 + $0x1b8] sm:$0xff]  ;;  %6244 = vst [vmem:[#allocation12_spill] sm:$0xff] %v4689_v47  ;;  %v4698_v50 = vpack.c.bf16 %v69_v41, %v68_v40  ;;  %v4701_v51 = vpack.c.bf16 %v55_v43, %v54_v42 }
   0xe   :  { %6243 = vst [vmem:[#allocation11_spill] sm:$0xff] %v4680_v44  ;;  %v38_v48 = vld [vmem:[%s6139_s2 + $0x30] sm:$0xff]  ;;  %v39_v49 = vld [vmem:[%s6139_s2 + $0x38] sm:$0xff]  ;;  %v56_v52 = vld [vmem:[%s6139_s2 + $0xc0] sm:$0xff]  ;;  %v4707_v53 = vpack.c.bf16 %v87_v46, %v86_v45 }
   0xf   :  { %3921 = vmatpush3.bf16.msra.mxu1 %v4645_v33  ;;  %3953 = vmatpush3.bf16.msra.mxu0 %v4654_v36  ;;  %6245 = vst [vmem:[#allocation13_spill] sm:$0xff] %v4698_v50  ;;  %6246 = vst [vmem:[#allocation14_spill] sm:$0xff] %v4701_v51  ;;  %v70_v54 = vld [vmem:[%s6139_s2 + $0x130] sm:$0xff]  ;;  %v71_v55 = vld [vmem:[%s6139_s2 + $0x138] sm:$0xff]  ;;  %v4725_v59 = vpack.c.bf16 %v39_v49, %v38_v48 }
  0x10   :  { %3923 = vmatprep.subr.bf16.mxu1 %v4661_v38  ;;  %3955 = vmatprep.subr.bf16.mxu0 %v4680_v44  ;;  %6247 = vst [vmem:[#allocation15_spill] sm:$0xff] %v4707_v53  ;;  %v57_v56 = vld [vmem:[%s6139_s2 + $0xc8] sm:$0xff]  ;;  %v88_v57 = vld [vmem:[%s6139_s2 + $0x1c0] sm:$0xff]  ;;  %v4734_v62 = vpack.c.bf16 %v71_v55, %v70_v54  ;;  %v58_v0 = vld [vmem:[%s6139_s2 + $0xd0] sm:$0xff] }
  0x11   :  { %v89_v58 = vld [vmem:[%s6139_s2 + $0x1c8] sm:$0xff]  ;;  %6248 = vst [vmem:[#allocation16_spill] sm:$0xff] %v4725_v59  ;;  %v40_v60 = vld [vmem:[%s6139_s2 + $0x40] sm:$0xff]  ;;  %v4737_v63 = vpack.c.bf16 %v57_v56, %v56_v52  ;;  %v59_v5 = vld [vmem:[%s6139_s2 + $0xd8] sm:$0xff] }
  0x12   :  { %v41_v61 = vld [vmem:[%s6139_s2 + $0x48] sm:$0xff]  ;;  %6249 = vst [vmem:[#allocation17_spill] sm:$0xff] %v4734_v62  ;;  %v4743_v1 = vpack.c.bf16 %v89_v58, %v88_v57  ;;  %v72_v3 = vld [vmem:[%s6139_s2 + $0x140] sm:$0xff]  ;;  %v90_v6 = vld [vmem:[%s6139_s2 + $0x1d0] sm:$0xff]  ;;  %v4773_v12 = vpack.c.bf16 %v59_v5, %v58_v0 }
  0x13   :  { %3925 = vmatpush3.bf16.msra.mxu1 %v4689_v47  ;;  %3957 = vmatpush3.bf16.msra.mxu0 %v4698_v50  ;;  %6250 = vst [vmem:[#allocation18_spill] sm:$0xff] %v4737_v63  ;;  %v73_v4 = vld [vmem:[%s6139_s2 + $0x148] sm:$0xff]  ;;  %v91_v7 = vld [vmem:[%s6139_s2 + $0x1d8] sm:$0xff]  ;;  %v4761_v8 = vpack.c.bf16 %v41_v61, %v40_v60  ;;  %v42_v9 = vld [vmem:[%s6139_s2 + $0x50] sm:$0xff] }
  0x14   :  { %3927 = vmatprep.subr.bf16.mxu1 %v4701_v51  ;;  %3959 = vmatprep.subr.bf16.mxu0 %v4707_v53  ;;  %6251 = vst [vmem:[#allocation19_spill] sm:$0xff] %v4743_v1  ;;  %v43_v10 = vld [vmem:[%s6139_s2 + $0x58] sm:$0xff]  ;;  %v4770_v11 = vpack.c.bf16 %v73_v4, %v72_v3  ;;  %6254 = vst [vmem:[#allocation22_spill] sm:$0xff] %v4773_v12  ;;  %v60_v13 = vld [vmem:[%s6139_s2 + $0xe0] sm:$0xff]  ;;  %v4779_v15 = vpack.c.bf16 %v91_v7, %v90_v6 }
  0x15   :  { %6252 = vst [vmem:[#allocation20_spill] sm:$0xff] %v4761_v8  ;;  %v74_v16 = vld [vmem:[%s6139_s2 + $0x150] sm:$0xff]  ;;  %v75_v17 = vld [vmem:[%s6139_s2 + $0x158] sm:$0xff]  ;;  %v61_v19 = vld [vmem:[%s6139_s2 + $0xe8] sm:$0xff]  ;;  %v4797_v23 = vpack.c.bf16 %v43_v10, %v42_v9 }
  0x16   :  { %6253 = vst [vmem:[#allocation21_spill] sm:$0xff] %v4770_v11  ;;  %6255 = vst [vmem:[#allocation23_spill] sm:$0xff] %v4779_v15  ;;  %v92_v21 = vld [vmem:[%s6139_s2 + $0x1e0] sm:$0xff]  ;;  %v93_v22 = vld [vmem:[%s6139_s2 + $0x1e8] sm:$0xff]  ;;  %v4800_v25 = vpack.c.bf16 %v75_v17, %v74_v16  ;;  %v4803_v26 = vpack.c.bf16 %v61_v19, %v60_v13 }
  0x17   :  { %3929 = vmatpush3.bf16.msra.mxu1 %v4725_v59  ;;  %3961 = vmatpush3.bf16.msra.mxu0 %v4734_v62  ;;  %6256 = vst [vmem:[#allocation24_spill] sm:$0xff] %v4797_v23  ;;  %v44_v28 = vld [vmem:[%s6139_s2 + $0x60] sm:$0xff]  ;;  %v45_v29 = vld [vmem:[%s6139_s2 + $0x68] sm:$0xff]  ;;  %v4812_v30 = vpack.c.bf16 %v93_v22, %v92_v21  ;;  %v62_v32 = vld [vmem:[%s6139_s2 + $0xf0] sm:$0xff] }
  0x18   :  { %3931 = vmatprep.subr.bf16.mxu1 %v4737_v63  ;;  %3963 = vmatprep.subr.bf16.mxu0 %v4743_v1  ;;  %6257 = vst [vmem:[#allocation25_spill] sm:$0xff] %v4800_v25  ;;  %6258 = vst [vmem:[#allocation26_spill] sm:$0xff] %v4803_v26  ;;  %v63_v34 = vld [vmem:[%s6139_s2 + $0xf8] sm:$0xff]  ;;  %v4821_v35 = vpack.c.bf16 %v45_v29, %v44_v28  ;;  %v46_v39 = vld [vmem:[%s6139_s2 + $0x70] sm:$0xff] }
  0x19   :  { %6259 = vst [vmem:[#allocation27_spill] sm:$0xff] %v4812_v30  ;;  %v4825_v37 = vpack.c.bf16 %v63_v34, %v62_v32  ;;  %v47_v40 = vld [vmem:[%s6139_s2 + $0x78] sm:$0xff]  ;;  %v76_v42 = vld [vmem:[%s6139_s2 + $0x160] sm:$0xff]  ;;  %v77_v43 = vld [vmem:[%s6139_s2 + $0x168] sm:$0xff] }
  0x1a   :  { %6260 = vst [vmem:[#allocation28_spill] sm:$0xff] %v4821_v35  ;;  %v4835_v41 = vpack.c.bf16 %v47_v40, %v46_v39  ;;  %v4845_v45 = vpack.c.bf16 %v77_v43, %v76_v42  ;;  %v112_v46 = vld [vmem:[%s6139_s2 + $0x280] sm:$0xff]  ;;  %v113_v48 = vld [vmem:[%s6139_s2 + $0x288] sm:$0xff]  ;;  %v94_v52 = vld [vmem:[%s6139_s2 + $0x1f0] sm:$0xff] }
  0x1b   :  { %3933 = vmatpush3.bf16.msra.mxu1 %v4761_v8  ;;  %3965 = vmatpush3.bf16.msra.mxu0 %v4770_v11  ;;  %6261 = vst [vmem:[#allocation29_spill] sm:$0xff] %v4825_v37  ;;  %v4854_v49 = vpack.c.bf16 %v113_v48, %v112_v46  ;;  %v95_v54 = vld [vmem:[%s6139_s2 + $0x1f8] sm:$0xff]  ;;  %v78_v56 = vld [vmem:[%s6139_s2 + $0x170] sm:$0xff]  ;;  %v96_v60 = vld [vmem:[%s6139_s2 + $0x200] sm:$0xff] }
  0x1c   :  { %3935 = vmatprep.subr.bf16.mxu1 %v4773_v12  ;;  %3967 = vmatprep.subr.bf16.mxu0 %v4779_v15  ;;  %6262 = vst [vmem:[#allocation30_spill] sm:$0xff] %v4835_v41  ;;  %6263 = vst [vmem:[#allocation31_spill] sm:$0xff] %v4845_v45  ;;  %v4862_v55 = vpack.c.bf16 %v95_v54, %v94_v52  ;;  %v79_v57 = vld [vmem:[%s6139_s2 + $0x178] sm:$0xff]  ;;  %v97_v61 = vld [vmem:[%s6139_s2 + $0x208] sm:$0xff] }
  0x1d   :  { %6264 = vst [vmem:[#allocation32_spill] sm:$0xff] %v4854_v49  ;;  %v4872_v58 = vpack.c.bf16 %v79_v57, %v78_v56  ;;  %v114_v0 = vld [vmem:[%s6139_s2 + $0x290] sm:$0xff]  ;;  %v115_v3 = vld [vmem:[%s6139_s2 + $0x298] sm:$0xff]  ;;  %v4891_v6 = vpack.c.bf16 %v97_v61, %v96_v60  ;;  %v116_v17 = vld [vmem:[%s6139_s2 + $0x2a0] sm:$0xff] }
  0x1e   :  { %6265 = vst [vmem:[#allocation33_spill] sm:$0xff] %v4862_v55  ;;  %v4897_v10 = vpack.c.bf16 %v115_v3, %v114_v0  ;;  %v98_v13 = vld [vmem:[%s6139_s2 + $0x210] sm:$0xff]  ;;  %v99_v16 = vld [vmem:[%s6139_s2 + $0x218] sm:$0xff]  ;;  %v117_v19 = vld [vmem:[%s6139_s2 + $0x2a8] sm:$0xff] }
  0x1f   :  { %3937 = vmatpush3.bf16.msra.mxu1 %v4797_v23  ;;  %3969 = vmatpush3.bf16.msra.mxu0 %v4800_v25  ;;  %6266 = vst [vmem:[#allocation34_spill] sm:$0xff] %v4872_v58  ;;  %v4917_v22 = vpack.c.bf16 %v99_v16, %v98_v13  ;;  %v4924_v32 = vpack.c.bf16 %v117_v19, %v116_v17  ;;  %v100_v34 = vld [vmem:[%s6139_s2 + $0x220] sm:$0xff]  ;;  %v101_v39 = vld [vmem:[%s6139_s2 + $0x228] sm:$0xff]  ;;  %v118_v43 = vld [vmem:[%s6139_s2 + $0x2b0] sm:$0xff] }
  0x20   :  { %3939 = vmatprep.subr.bf16.mxu1 %v4803_v26  ;;  %3971 = vmatprep.subr.bf16.mxu0 %v4812_v30  ;;  %v119_v46 = vld [vmem:[%s6139_s2 + $0x2b8] sm:$0xff]  ;;  %v4950_v54 = vpack.c.bf16 %v101_v39, %v100_v34  ;;  %v102_v3 = vld [vmem:[%s6139_s2 + $0x230] sm:$0xff]  ;;  %v120_v17 = vld [vmem:[%s6139_s2 + $0x2c0] sm:$0xff] }
  0x21   :  { %v4961_v0 = vpack.c.bf16 %v119_v46, %v118_v43  ;;  %v103_v13 = vld [vmem:[%s6139_s2 + $0x238] sm:$0xff]  ;;  %v121_v19 = vld [vmem:[%s6139_s2 + $0x2c8] sm:$0xff]  ;;  %v104_v2 = vld [vmem:[%s6139_s2 + $0x240] sm:$0xff] }
  0x22   :  { %6267 = vst [vmem:[#allocation35_spill] sm:$0xff] %v4950_v54  ;;  %v4986_v43 = vpack.c.bf16 %v103_v13, %v102_v3  ;;  %v4989_v46 = vpack.c.bf16 %v121_v19, %v120_v17  ;;  %v106_v17 = vld [vmem:[%s6139_s2 + $0x250] sm:$0xff]  ;;  %v107_v19 = vld [vmem:[%s6139_s2 + $0x258] sm:$0xff] }
  0x23   :  { %3941 = vmatpush3.bf16.msra.mxu1 %v4821_v35  ;;  %3973 = vmatpush3.bf16.msra.mxu0 %v4845_v45  ;;  %6268 = vst [vmem:[#allocation36_spill] sm:$0xff] %v4961_v0 }
  0x24   :  { %3943 = vmatprep.subr.bf16.mxu1 %v4825_v37  ;;  %3975 = vmatprep.subr.bf16.mxu0 %v4862_v55  ;;  %6269 = vst [vmem:[#allocation37_spill] sm:$0xff] %v4986_v43  ;;  %6270 = vst [vmem:[#allocation38_spill] sm:$0xff] %v4989_v46 }
  0x27   :  { %3945 = vmatpush3.bf16.msra.mxu1 %v4835_v41  ;;  %3977 = vmatpush3.bf16.msra.mxu0 %v4872_v58 }
  0x28   :  { %3979 = vmatprep.subr.bf16.mxu1 %v4854_v49 }
  0xd7   :  { %v4887_v4 = vpop.f32.mrb[0].mxu0  ;;  %v4889_v5 = vpop.f32.mrb[0].mxu1 }
  0xd8   :  { %v4893_v7 = vpop.f32.mrb[1].mxu0  ;;  %v4895_v9 = vpop.f32.mrb[1].mxu1  ;;  %v397_v57 = vmul.f32 %v4887_v4, %v4887_v4  ;;  %v403_v34 = vmul.f32 %v4889_v5, %v4889_v5 }
  0xd9   :  { %473 = vmatprep.mubr.f32.mxu1 %v4893_v7  ;;  %v398_v42 = vmul.f32 %v4893_v7, %v4893_v7  ;;  %v404_v60 = vmul.f32 %v4895_v9, %v4895_v9 }
  0xda   :  { %474 = vmatmul.mubr.f32.vlgmr.msra.gmra.mrb[6].mxu1 %v4887_v4 }
  0xdb   :  { %3981 = vmatpush3.bf16.msra.mxu1 %v4891_v6  ;;  %v4914_v21 = vpop.f32.mrb[2].mxu1  ;;  %478 = vmatprep.mubr.f32.mxu1 %v4895_v9  ;;  %v4919_v28 = vpop.f32.mrb[2].mxu0 }
  0xdc   :  { %v4921_v29 = vpop.f32.mrb[3].mxu1  ;;  %3983 = vmatprep.subr.bf16.mxu1 %v4897_v10  ;;  %v4932_v40 = vpop.f32.mrb[3].mxu0  ;;  %v399_v39 = vmul.f32 %v4914_v21, %v4914_v21 }
  0xdd   :  { %558 = vmatprep.mubr.f32.mxu0 %v4921_v29  ;;  %v400_v48 = vmul.f32 %v4921_v29, %v4921_v29 }
  0xde   :  { %479 = vmatmul.mubr.f32.gmra.mrb[8].mxu1 %v4889_v5  ;;  %559 = vmatmul.mubr.f32.vlgmr.msra.gmra.mrb[6].mxu0 %v4914_v21 }
  0xdf   :  { %3985 = vmatpush3.bf16.msra.mxu1 %v4917_v22  ;;  %v4948_v52 = vpop.f32.mrb[4].mxu1  ;;  %483 = vmatprep.mubr.f32.mxu1 %v398_v42  ;;  %v4952_v56 = vpop.f32.mrb[4].mxu0 }
  0xe0   :  { %v4958_v61 = vpop.f32.mrb[5].mxu1  ;;  %3987 = vmatprep.subr.bf16.mxu1 %v4924_v32  ;;  %v4969_v16 = vpop.f32.mrb[5].mxu0  ;;  %v405_v3 = vmul.f32 %v4948_v52, %v4948_v52 }
  0xe1   :  { %563 = vmatprep.mubr.f32.mxu0 %v4958_v61  ;;  %v406_v42 = vmul.f32 %v4958_v61, %v4958_v61 }
  0xe2   :  { %484 = vmatmul.mubr.f32.gmra.mrb[10].mxu1 %v397_v57  ;;  %564 = vmatmul.mubr.f32.gmra.mrb[8].mxu0 %v4948_v52  ;;  %v105_v57 = vld [vmem:[%s6139_s2 + $0x248] sm:$0xff] }
  0xe3   :  { %3989 = vmatpush3.bf16.msra.mxu1 %v4950_v54  ;;  %568 = vmatprep.mubr.f32.mxu0 %v400_v48  ;;  %v122_v54 = vld [vmem:[%s6139_s2 + $0x2d0] sm:$0xff]  ;;  %v123_v48 = vld [vmem:[%s6139_s2 + $0x2d8] sm:$0xff]  ;;  %v5006_v13 = vpack.c.bf16 %v105_v57, %v104_v2  ;;  %v124_v2 = vld [vmem:[%s6139_s2 + $0x2e0] sm:$0xff] }
  0xe4   :  { %3991 = vmatprep.subr.bf16.mxu1 %v4961_v0  ;;  %488 = vmatprep.mubr.f32.mxu1 %v404_v60  ;;  %v5009_v60 = vpack.c.bf16 %v123_v48, %v122_v54  ;;  %v5025_v54 = vpack.c.bf16 %v107_v19, %v106_v17  ;;  %v108_v57 = vld [vmem:[%s6139_s2 + $0x260] sm:$0xff]  ;;  %v109_v48 = vld [vmem:[%s6139_s2 + $0x268] sm:$0xff]  ;;  %v127_v17 = vld [vmem:[%s6139_s2 + $0x2f8] sm:$0xff] }
  0xe5   :  { %6271 = vst [vmem:[#allocation39_spill] sm:$0xff] %v5006_v13  ;;  %v5044_v19 = vpack.c.bf16 %v109_v48, %v108_v57  ;;  %v402_v57 = vmul.f32 %v4932_v40, %v4932_v40  ;;  %v408_v48 = vmul.f32 %v4969_v16, %v4969_v16 }
  0xe6   :  { %569 = vmatmul.mubr.f32.gmra.mrb[10].mxu0 %v399_v39  ;;  %489 = vmatmul.mubr.f32.gmra.mrb[12].mxu1 %v403_v34  ;;  %6272 = vst [vmem:[#allocation40_spill] sm:$0xff] %v5009_v60  ;;  %v125_v34 = vld [vmem:[%s6139_s2 + $0x2e8] sm:$0xff]  ;;  %6273 = vst [vmem:[#allocation41_spill] sm:$0xff] %v5025_v54  ;;  %v6274_v39 = vmov 0.0  }
  0xe7   :  { %3993 = vmatpush3.bf16.msra.mxu1 %v4986_v43  ;;  %573 = vmatprep.mubr.f32.mxu0 %v406_v42  ;;  %v5029_v42 = vpack.c.bf16 %v125_v34, %v124_v2  ;;  %6276 = vst [vmem:[#allocation43_spill] sm:$0xff] %v5044_v19  ;;  %v110_v34 = vld [vmem:[%s6139_s2 + $0x270] sm:$0xff] }
  0xe8   :  { %3995 = vmatprep.subr.bf16.mxu1 %v4989_v46  ;;  %643 = vmatprep.mubr.f32.mxu1 %v4932_v40 }
  0xe9   :  { %6275 = vst [vmem:[#allocation42_spill] sm:$0xff] %v5029_v42 }
  0xea   :  { %574 = vmatmul.mubr.f32.gmra.mrb[12].mxu0 %v405_v3  ;;  %v126_v3 = vld [vmem:[%s6139_s2 + $0x2f0] sm:$0xff] }
  0xeb   :  { %3997 = vmatpush3.bf16.msra.mxu1 %v5006_v13  ;;  %1067 = vmatprep.mubr.f32.mxu0 %v6274_v39  ;;  %v5047_v2 = vpack.c.bf16 %v127_v17, %v126_v3  ;;  %v407_v3 = vmul.f32 %v4952_v56, %v4952_v56  ;;  %v4475_v17 = vmov 0  }
  0xec   :  { %3999 = vmatprep.subr.bf16.mxu1 %v5009_v60  ;;  %v111_v60 = vld [vmem:[%s6139_s2 + $0x278] sm:$0xff]  ;;  %4454 = vset.pattern.permute.xlu0 %v4475_v17 }
  0xed   :  { %6277 = vst [vmem:[#allocation44_spill] sm:$0xff] %v5047_v2  ;;  %v5056_v13 = vpack.c.bf16 %v111_v60, %v110_v34  ;;  %v401_v60 = vmul.f32 %v4919_v28, %v4919_v28  ;;  %4455 = vset.pattern.permute.xlu1 %v4475_v17 }
  0xef   :  { %4001 = vmatpush3.bf16.msra.mxu1 %v5025_v54  ;;  %6278 = vst [vmem:[#allocation45_spill] sm:$0xff] %v5056_v13 }
  0xf0   :  { %4003 = vmatprep.subr.bf16.mxu1 %v5029_v42 }
  0xf3   :  { %4005 = vmatpush3.bf16.msra.mxu1 %v5044_v19 }
  0xf4   :  { %4007 = vmatprep.subr.bf16.mxu1 %v5047_v2 }
  0xf7   :  { %4009 = vmatpush3.bf16.msra.mxu1 %v5056_v13 }
  0xf8   :  { %4091 = vmatprep.subr.bf16.mxu1 %v4603_v20 }
  0xfa   :  { %644 = vmatmul.mubr.f32.vlgmr.msra.gmra.mrb[14].mxu1 %v4919_v28 }
  0xfb   :  { %648 = vmatprep.mubr.f32.mxu1 %v4969_v16  ;;  %4093 = vmatpush3.bf16.msra.mxu1 %v4616_v24 }
  0xfc   :  { %4095 = vmatprep.subr.bf16.mxu1 %v4639_v31 }
  0xfe   :  { %649 = vmatmul.mubr.f32.gmra.mrb[16].mxu1 %v4952_v56 }
  0xff   :  { %653 = vmatprep.mubr.f32.mxu1 %v402_v57  ;;  %4097 = vmatpush3.bf16.msra.mxu1 %v4654_v36 }
 0x100   :  { %4099 = vmatprep.subr.bf16.mxu1 %v4680_v44 }
 0x102   :  { %654 = vmatmul.mubr.f32.gmra.mrb[18].mxu1 %v401_v60 }
 0x103   :  { %658 = vmatprep.mubr.f32.mxu1 %v408_v48  ;;  %4101 = vmatpush3.bf16.msra.mxu1 %v4698_v50 }
 0x104   :  { %4103 = vmatprep.subr.bf16.mxu1 %v4707_v53 }
 0x106   :  { %659 = vmatmul.mubr.f32.gmra.mrb[20].mxu1 %v407_v3 }
 0x107   :  { %4105 = vmatpush3.bf16.msra.mxu1 %v4734_v62 }
 0x108   :  { %4107 = vmatprep.subr.bf16.mxu1 %v4743_v1 }
 0x10b   :  { %4109 = vmatpush3.bf16.msra.mxu1 %v4770_v11 }
 0x10c   :  { %4111 = vmatprep.subr.bf16.mxu1 %v4779_v15 }
 0x10f   :  { %4113 = vmatpush3.bf16.msra.mxu1 %v4800_v25 }
 0x110   :  { %4115 = vmatprep.subr.bf16.mxu1 %v4812_v30 }
 0x113   :  { %4117 = vmatpush3.bf16.msra.mxu1 %v4845_v45 }
 0x114   :  { %4119 = vmatprep.subr.bf16.mxu1 %v4862_v55 }
 0x117   :  { %4121 = vmatpush3.bf16.msra.mxu1 %v4872_v58 }
 0x1ad   :  { %v3304_v34 = vpop.f32.mrb[6].mxu1 }
 0x1ae   :  { %v3305_v57 = vpop.f32.mrb[7].mxu1 }
 0x1af   :  { %v3306_v60 = vadd.f32 %v3305_v57, %v3304_v34 }
 0x1b1   :  { %v3348_v48 = vpop.f32.mrb[6].mxu0  ;;  %v3307_v3 = vpop.f32.mrb[8].mxu1 }
 0x1b2   :  { %v3349_v11 = vpop.f32.mrb[7].mxu0  ;;  %v3308_v15 = vpop.f32.mrb[9].mxu1 }
 0x1b3   :  { %v3350_v1 = vadd.f32 %v3349_v11, %v3348_v48  ;;  %v3309_v25 = vadd.f32 %v3308_v15, %v3307_v3 }
 0x1b5   :  { %v561_v62 = vadd.f32 %v3350_v1, %v3306_v60  ;;  %v3310_v30 = vpop.f32.mrb[10].mxu1  ;;  %v3351_v53 = vpop.f32.mrb[8].mxu0 }
 0x1b6   :  { %v3311_v45 = vpop.f32.mrb[11].mxu1  ;;  %v3352_v50 = vpop.f32.mrb[9].mxu0 }
 0x1b7   :  { %v3312_v55 = vadd.f32 %v3311_v45, %v3310_v30  ;;  %v3353_v44 = vadd.f32 %v3352_v50, %v3351_v53 }
 0x1b9   :  { %v566_v58 = vadd.f32 %v3353_v44, %v3309_v25  ;;  %v3354_v36 = vpop.f32.mrb[10].mxu0  ;;  %v3313_v31 = vpop.f32.mrb[12].mxu1 }
 0x1ba   :  { %v3355_v17 = vpop.f32.mrb[11].mxu0  ;;  %v3314_v24 = vpop.f32.mrb[13].mxu1 }
 0x1bb   :  { %v3356_v20 = vadd.f32 %v3355_v17, %v3354_v36  ;;  %v3315_v34 = vadd.f32 %v3314_v24, %v3313_v31 }
 0x1bd   :  { %v571_v57 = vadd.f32 %v3356_v20, %v3312_v55  ;;  %v3357_v13 = vpop.f32.mrb[12].mxu0 }
 0x1be   :  { %v3358_v2 = vpop.f32.mrb[13].mxu0 }
 0x1bf   :  { %v3359_v19 = vadd.f32 %v3358_v2, %v3357_v13 }
 0x1c1   :  { %v576_v11 = vadd.f32 %v3359_v19, %v3315_v34 }
 0x1cd   :  { %v3392_v15 = vpop.f32.mrb[14].mxu1 }
 0x1ce   :  { %v3393_v1 = vpop.f32.mrb[15].mxu1 }
 0x1cf   :  { %v3394_v60 = vadd.f32 %v3393_v1, %v3392_v15 }
 0x1d1   :  { %v646_v48 = vadd.f32 %v3394_v60, %v561_v62  ;;  %v3395_v3 = vpop.f32.mrb[16].mxu1 }
 0x1d2   :  { %v3396_v42 = vpop.f32.mrb[17].mxu1 }
 0x1d3   :  { %v3397_v30 = vadd.f32 %v3396_v42, %v3395_v3  ;;  %v664_v25 = vmul.f32 0.0015432099, %v646_v48 }
 0x1d5   :  { %v651_v50 = vadd.f32 %v3397_v30, %v566_v58  ;;  %v3398_v44 = vpop.f32.mrb[18].mxu1  ;;  %v668_v20 = vmul.f32 %v664_v25, %v664_v25  ;;  %v393_v58 = vld [vmem:[%s6140_s7] sm:$0xff] }
 0x1d6   :  { %v3399_v53 = vpop.f32.mrb[19].mxu1 }
 0x1d7   :  { %v3400_v45 = vadd.f32 %v3399_v53, %v3398_v44  ;;  %v665_v31 = vmul.f32 0.0015432099, %v651_v50  ;;  %v396_v50 = vld [vmem:[%s6140_s7 + $0x18] sm:$0xff] }
 0x1d9   :  { %v656_v54 = vadd.f32 %v3400_v45, %v571_v57  ;;  %v3401_v36 = vpop.f32.mrb[20].mxu1  ;;  %v669_v17 = vmul.f32 %v665_v31, %v665_v31 }
 0x1da   :  { %v3402_v24 = vpop.f32.mrb[21].mxu1 }
 0x1db   :  { %v666_v55 = vmul.f32 0.0015432099, %v656_v54  ;;  %v3403_v13 = vadd.f32 %v3402_v24, %v3401_v36  ;;  %v395_v54 = vld [vmem:[%s6140_s7 + $0x10] sm:$0xff] }
 0x1dd   :  { %v670_v19 = vsub.f32 %v666_v55, %v668_v20  ;;  %v661_v2 = vadd.f32 %v3403_v13, %v576_v11  ;;  %v394_v11 = vld [vmem:[%s6140_s7 + $0x8] sm:$0xff] }
 0x1df   :  { %v672_v34 = vadd.f32 1e-05, %v670_v19  ;;  %v667_v62 = vmul.f32 0.0015432099, %v661_v2 }
 0x1e1   :  { %4456 = vrsqrt.f32 %v672_v34  ;;  %v671_v15 = vsub.f32 %v667_v62, %v669_v17 }
 0x1e3   :  { %v673_v42 = vadd.f32 1e-05, %v671_v15 }
 0x1e5   :  { %4458 = vrsqrt.f32 %v673_v42 }
 0x1eb   :  { %v4457_v57 = vpop.eup %4456 }
 0x1ec   :  { %v676_v1 = vmul.f32 %v4457_v57, %v393_v58 }
 0x1ee   :  { %680 = vperm.xlu0 %4454, %v676_v1   ;;  %v700_v60 = vmul.f32 %v676_v1, %v664_v25 }
 0x1ef   :  { %v4459_v48 = vpop.eup %4458 }
 0x1f0   :  { %v702_v3 = vsub.f32 %v395_v54, %v700_v60  ;;  %v677_v30 = vmul.f32 %v4459_v48, %v394_v11 }
 0x1f2   :  { %706 = vperm.xlu1 %4455, %v702_v3   ;;  %685 = vperm.xlu0 %4454, %v677_v30   ;;  %v701_v44 = vmul.f32 %v677_v30, %v665_v31 }
 0x1f4   :  { %v703_v53 = vsub.f32 %v396_v50, %v701_v44 }
 0x1f6   :  { %711 = vperm.xlu1 %4455, %v703_v53   ;;  %v887_v53 = vld [vmem:[%s6141_s1 + $0x8] sm:$0xff] }
 0x26d   :  { %v681_v45 = vpop.permute.xlu0 %680 }
 0x26e   :  { %v692_v36 = vmul.f32 %v681_v45, %v4919_v28  ;;  %v688_v24 = vmul.f32 %v681_v45, %v4887_v4  ;;  %v689_v20 = vmul.f32 %v681_v45, %v4893_v7  ;;  %v690_v13 = vmul.f32 %v681_v45, %v4914_v21 }
 0x26f   :  { %v691_v19 = vmul.f32 %v681_v45, %v4921_v29  ;;  %v693_v2 = vmul.f32 %v681_v45, %v4932_v40 }
 0x271   :  { %v707_v25 = vpop.permute.xlu1 %706  ;;  %v686_v55 = vpop.permute.xlu0 %685 }
 0x272   :  { %v714_v17 = vadd.f32 %v707_v25, %v688_v24  ;;  %v715_v34 = vadd.f32 %v707_v25, %v689_v20  ;;  %v718_v31 = vadd.f32 %v707_v25, %v692_v36  ;;  %v694_v62 = vmul.f32 %v686_v55, %v4889_v5  ;;  %v893_v36 = vld [vmem:[%s6141_s1 + $0x38] sm:$0xff] }
 0x273   :  { %v695_v15 = vmul.f32 %v686_v55, %v4895_v9  ;;  %v696_v28 = vmul.f32 %v686_v55, %v4948_v52  ;;  %v697_v4 = vmul.f32 %v686_v55, %v4958_v61  ;;  %v716_v7 = vadd.f32 %v707_v25, %v690_v13 }
 0x274   :  { %v717_v42 = vadd.f32 %v707_v25, %v691_v19  ;;  %v698_v58 = vmul.f32 %v686_v55, %v4952_v56  ;;  %v699_v21 = vmul.f32 %v686_v55, %v4969_v16  ;;  %v719_v11 = vadd.f32 %v707_v25, %v693_v2  ;;  %v892_v19 = vld [vmem:[%s6141_s1 + $0x30] sm:$0xff]  ;;  %v886_v2 = vld [vmem:[%s6141_s1] sm:$0xff] }
 0x275   :  { %v712_v29 = vpop.permute.xlu1 %711  ;;  %v744_v16 = vlaneseq }
 0x276   :  { %v720_v57 = vadd.f32 %v712_v29, %v694_v62  ;;  %v721_v40 = vadd.f32 %v712_v29, %v695_v15  ;;  %v722_v1 = vadd.f32 %v712_v29, %v696_v28  ;;  %v723_v54 = vadd.f32 %v712_v29, %v697_v4 }
 0x277   :  { %v724_v60 = vadd.f32 %v712_v29, %v698_v58  ;;  %v725_v5 = vadd.f32 %v712_v29, %v699_v21  ;;  %v5213_v30 = vand.u32 127, %v744_v16  ;;  %v899_v21 = vld [vmem:[%s6141_s1 + $0x68] sm:$0xff]  ;;  %v898_v16 = vld [vmem:[%s6141_s1 + $0x60] sm:$0xff] }
 0x278   :  { %v5111_v48 = vadd.f32 %v720_v57, %v714_v17  ;;  %v5113_v9 = vadd.f32 %v721_v40, %v715_v34  ;;  %v5115_v52 = vadd.f32 %v722_v1, %v716_v7  ;;  %v5117_v61 = vadd.f32 %v723_v54, %v717_v42  ;;  %v905_v57 = vld [vmem:[%s6141_s1 + $0x98] sm:$0xff] }
 0x279   :  { %v5119_v3 = vadd.f32 %v724_v60, %v718_v31  ;;  %v5121_v56 = vadd.f32 %v725_v5, %v719_v11  ;;  %vm746_vm2 = vcmp.lt.s32.totalorder %v5213_v30, 19  ;;  %vm765_vm3 = vcmp.lt.s32.totalorder %v5213_v30, 18  ;;  %v904_v5 = vld [vmem:[%s6141_s1 + $0x90] sm:$0xff] }
 0x27a   :  { %734 = vrot.lane.b32.xlu1 %v5113_v9, %s4476_s17  ;;  %732 = vrot.lane.b32.xlu0 %v5111_v48, %s4476_s17  ;;  %vm784_vm4 = vcmp.lt.s32.totalorder %v5213_v30, 17  ;;  %vm803_vm5 = vcmp.lt.s32.totalorder %v5213_v30, 1  ;;  %vm822_vm6 = vcmp.lt.s32.totalorder %v5213_v30, 127  ;;  %vm841_vm7 = vcmp.lt.s32.totalorder %v5213_v30, 111 }
 0x27b   :  { %vm860_vm8 = vcmp.lt.s32.totalorder %v5213_v30, 110  ;;  %vm879_vm9 = vcmp.lt.s32.totalorder %v5213_v30, 109 }
 0x27e   :  { %755 = vrot.lane.b32.xlu1 %v5113_v9, %s4477_s18  ;;  %753 = vrot.lane.b32.xlu0 %v5111_v48, %s4477_s18 }
 0x282   :  { %763 = vrot.lane.b32.xlu1 %v5121_v56, %s4477_s18  ;;  %742 = vrot.lane.b32.xlu0 %v5121_v56, %s4476_s17 }
 0x286   :  { %774 = vrot.lane.b32.xlu1 %v5113_v9, %s4478_s19  ;;  %772 = vrot.lane.b32.xlu0 %v5111_v48, %s4478_s19 }
 0x28a   :  { %793 = vrot.lane.b32.xlu1 %v5113_v9, %s4479_s20  ;;  %791 = vrot.lane.b32.xlu0 %v5111_v48, %s4479_s20 }
 0x28e   :  { %801 = vrot.lane.b32.xlu1 %v5121_v56, %s4479_s20  ;;  %782 = vrot.lane.b32.xlu0 %v5121_v56, %s4478_s19 }
 0x292   :  { %814 = vrot.lane.b32.xlu1 %v5115_v52, %s4480_s21  ;;  %812 = vrot.lane.b32.xlu0 %v5113_v9, %s4480_s21 }
 0x296   :  { %831 = vrot.lane.b32.xlu1 %v5113_v9, %s4481_s22  ;;  %810 = vrot.lane.b32.xlu0 %v5111_v48, %s4480_s21 }
 0x29a   :  { %850 = vrot.lane.b32.xlu1 %v5113_v9, %s4482_s23  ;;  %833 = vrot.lane.b32.xlu0 %v5115_v52, %s4481_s22 }
 0x29e   :  { %829 = vrot.lane.b32.xlu1 %v5111_v48, %s4481_s22  ;;  %852 = vrot.lane.b32.xlu0 %v5115_v52, %s4482_s23 }
 0x2a2   :  { %736 = vrot.lane.b32.xlu1 %v5115_v52, %s4476_s17  ;;  %848 = vrot.lane.b32.xlu0 %v5111_v48, %s4482_s23 }
 0x2a6   :  { %757 = vrot.lane.b32.xlu1 %v5115_v52, %s4477_s18  ;;  %738 = vrot.lane.b32.xlu0 %v5117_v61, %s4476_s17 }
 0x2aa   :  { %869 = vrot.lane.b32.xlu1 %v5113_v9, %s4483_s24  ;;  %759 = vrot.lane.b32.xlu0 %v5117_v61, %s4477_s18 }
 0x2ae   :  { %867 = vrot.lane.b32.xlu1 %v5111_v48, %s4483_s24  ;;  %871 = vrot.lane.b32.xlu0 %v5115_v52, %s4483_s24 }
 0x2b2   :  { %778 = vrot.lane.b32.xlu1 %v5117_v61, %s4478_s19  ;;  %776 = vrot.lane.b32.xlu0 %v5115_v52, %s4478_s19 }
 0x2b6   :  { %797 = vrot.lane.b32.xlu1 %v5117_v61, %s4479_s20  ;;  %795 = vrot.lane.b32.xlu0 %v5115_v52, %s4479_s20 }
 0x2ba   :  { %818 = vrot.lane.b32.xlu1 %v5119_v3, %s4480_s21  ;;  %816 = vrot.lane.b32.xlu0 %v5117_v61, %s4480_s21 }
 0x2be   :  { %837 = vrot.lane.b32.xlu1 %v5119_v3, %s4481_s22  ;;  %835 = vrot.lane.b32.xlu0 %v5117_v61, %s4481_s22 }
 0x2c2   :  { %856 = vrot.lane.b32.xlu1 %v5119_v3, %s4482_s23  ;;  %854 = vrot.lane.b32.xlu0 %v5117_v61, %s4482_s23 }
 0x2c6   :  { %761 = vrot.lane.b32.xlu1 %v5119_v3, %s4477_s18  ;;  %740 = vrot.lane.b32.xlu0 %v5119_v3, %s4476_s17 }
 0x2ca   :  { %875 = vrot.lane.b32.xlu1 %v5119_v3, %s4483_s24  ;;  %873 = vrot.lane.b32.xlu0 %v5117_v61, %s4483_s24 }
 0x2ce   :  { %799 = vrot.lane.b32.xlu1 %v5119_v3, %s4479_s20  ;;  %780 = vrot.lane.b32.xlu0 %v5119_v3, %s4478_s19 }
 0x2d2   :  { %839 = vrot.lane.b32.xlu1 %v5121_v56, %s4481_s22  ;;  %820 = vrot.lane.b32.xlu0 %v5121_v56, %s4480_s21 }
 0x2d6   :  { %877 = vrot.lane.b32.xlu1 %v5121_v56, %s4483_s24  ;;  %858 = vrot.lane.b32.xlu0 %v5121_v56, %s4482_s23 }
 0x2ec   :  { %v5215_v50 = vpop.permute.xlu1 %734  ;;  %v733_v44 = vpop.permute.xlu0 %732 }
 0x2ed   :  { %v751_v45 = vsel %vm746_vm2, %v733_v44, %v5215_v50 }
 0x2ee   :  { %v941_v55 = vmul.f32 %v887_v53, %v751_v45 }
 0x2f0   :  { %v5228_v24 = vpop.permute.xlu1 %755  ;;  %v754_v20 = vpop.permute.xlu0 %753 }
 0x2f1   :  { %v770_v25 = vsel %vm765_vm3, %v754_v20, %v5228_v24 }
 0x2f2   :  { %v947_v13 = vmul.f32 %v893_v36, %v770_v25 }
 0x2f4   :  { %v5239_v17 = vpop.permute.xlu1 %763  ;;  %v5241_v34 = vpop.permute.xlu0 %742  ;;  %v4010_v31 = vpack.c.bf16 %v947_v13, %v941_v55  ;;  %v917_v13 = vld [vmem:[%s6141_s1 + $0xf8] sm:$0xff] }
 0x2f5   :  { %v771_v62 = vsel %vm765_vm3, %v5239_v17, %v754_v20  ;;  %v752_v15 = vsel %vm746_vm2, %v5241_v34, %v733_v44 }
 0x2f6   :  { %v946_v28 = vmul.f32 %v892_v19, %v771_v62  ;;  %v940_v4 = vmul.f32 %v886_v2, %v752_v15  ;;  %4011 = vmatprep.subr.bf16.mxu0 %v4010_v31  ;;  %v911_v19 = vld [vmem:[%s6141_s1 + $0xc8] sm:$0xff] }
 0x2f8   :  { %v4012_v7 = vpack.c.bf16 %v946_v28, %v940_v4  ;;  %v5249_v42 = vpop.permute.xlu1 %774  ;;  %v773_v58 = vpop.permute.xlu0 %772  ;;  %v965_v4 = vmul.f32 %v911_v19, %v5113_v9  ;;  %v922_v19 = vld [vmem:[%s6141_s1 + $0x120] sm:$0xff] }
 0x2f9   :  { %v789_v29 = vsel %vm784_vm4, %v773_v58, %v5249_v42 }
 0x2fa   :  { %4013 = vmatpush1.bf16.msra.mxu0 %v4012_v7  ;;  %v953_v11 = vmul.f32 %v899_v21, %v789_v29  ;;  %v910_v7 = vld [vmem:[%s6141_s1 + $0xc0] sm:$0xff] }
 0x2fc   :  { %v5262_v40 = vpop.permute.xlu1 %793  ;;  %v792_v1 = vpop.permute.xlu0 %791 }
 0x2fd   :  { %v808_v54 = vsel %vm803_vm5, %v792_v1, %v5262_v40 }
 0x2fe   :  { %v959_v60 = vmul.f32 %v905_v57, %v808_v54  ;;  %v964_v54 = vmul.f32 %v910_v7, %v5111_v48  ;;  %v929_v48 = vld [vmem:[%s6141_s1 + $0x158] sm:$0xff] }
 0x300   :  { %v5273_v44 = vpop.permute.xlu1 %801  ;;  %v5275_v53 = vpop.permute.xlu0 %782  ;;  %v4014_v45 = vpack.c.bf16 %v959_v60, %v953_v11 }
 0x301   :  { %v809_v36 = vsel %vm803_vm5, %v5273_v44, %v792_v1  ;;  %v790_v20 = vsel %vm784_vm4, %v5275_v53, %v773_v58  ;;  %v916_v58 = vld [vmem:[%s6141_s1 + $0xf0] sm:$0xff] }
 0x302   :  { %v958_v25 = vmul.f32 %v904_v5, %v809_v36  ;;  %v952_v55 = vmul.f32 %v898_v16, %v790_v20  ;;  %4015 = vmatprep.subr.bf16.mxu0 %v4014_v45  ;;  %v923_v16 = vld [vmem:[%s6141_s1 + $0x128] sm:$0xff] }
 0x304   :  { %v4016_v2 = vpack.c.bf16 %v958_v25, %v952_v55  ;;  %v5290_v31 = vpop.permute.xlu1 %814  ;;  %v813_v62 = vpop.permute.xlu0 %812 }
 0x305   :  { %v826_v15 = vsel %vm822_vm6, %v813_v62, %v5290_v31 }
 0x306   :  { %v971_v28 = vmul.f32 %v917_v13, %v826_v15  ;;  %4017 = vmatpush1.bf16.msra.mxu0 %v4016_v2 }
 0x308   :  { %v832_v21 = vpop.permute.xlu1 %831  ;;  %v5302_v29 = vpop.permute.xlu0 %810  ;;  %v4018_v57 = vpack.c.bf16 %v971_v28, %v965_v4 }
 0x309   :  { %v827_v1 = vsel %vm822_vm6, %v5302_v29, %v813_v62  ;;  %v928_v62 = vld [vmem:[%s6141_s1 + $0x150] sm:$0xff] }
 0x30a   :  { %v970_v11 = vmul.f32 %v916_v58, %v827_v1  ;;  %4019 = vmatprep.subr.bf16.mxu0 %v4018_v57 }
 0x30c   :  { %v4020_v9 = vpack.c.bf16 %v970_v11, %v964_v54  ;;  %v851_v60 = vpop.permute.xlu1 %850  ;;  %v5309_v5 = vpop.permute.xlu0 %833 }
 0x30d   :  { %v845_v45 = vsel %vm841_vm7, %v832_v21, %v5309_v5 }
 0x30e   :  { %4021 = vmatpush1.bf16.msra.mxu0 %v4020_v9  ;;  %v977_v55 = vmul.f32 %v923_v16, %v845_v45  ;;  %v895_v16 = vld [vmem:[%s6141_s1 + $0x48] sm:$0xff] }
 0x310   :  { %v5321_v36 = vpop.permute.xlu1 %829  ;;  %v5323_v20 = vpop.permute.xlu0 %852 }
 0x311   :  { %v864_v25 = vsel %vm860_vm8, %v851_v60, %v5323_v20  ;;  %v846_v2 = vsel %vm841_vm7, %v5321_v36, %v832_v21 }
 0x312   :  { %v983_v13 = vmul.f32 %v929_v48, %v864_v25  ;;  %v976_v58 = vmul.f32 %v922_v19, %v846_v2  ;;  %v889_v25 = vld [vmem:[%s6141_s1 + $0x18] sm:$0xff]  ;;  %v935_v19 = vld [vmem:[%s6141_s1 + $0x188] sm:$0xff] }
 0x314   :  { %v737_v15 = vpop.permute.xlu1 %736  ;;  %v5337_v28 = vpop.permute.xlu0 %848  ;;  %v4022_v4 = vpack.c.bf16 %v983_v13, %v977_v55  ;;  %v934_v13 = vld [vmem:[%s6141_s1 + $0x180] sm:$0xff] }
 0x315   :  { %v865_v7 = vsel %vm860_vm8, %v5337_v28, %v851_v60  ;;  %v894_v60 = vld [vmem:[%s6141_s1 + $0x40] sm:$0xff]  ;;  %v750_v2 = vsel %vm746_vm2, %v5215_v50, %v737_v15 }
 0x316   :  { %v982_v57 = vmul.f32 %v928_v62, %v865_v7  ;;  %4023 = vmatprep.subr.bf16.mxu0 %v4022_v4  ;;  %v5390_v50 = vld [vmem:[%s6142_s4] sm:$0xff] }
 0x318   :  { %v4024_v1 = vpack.c.bf16 %v982_v57, %v976_v58  ;;  %v758_v54 = vpop.permute.xlu1 %757  ;;  %v5342_v11 = vpop.permute.xlu0 %738 }
 0x319   :  { %v769_v48 = vsel %vm765_vm3, %v5228_v24, %v758_v54  ;;  %v749_v55 = vsel %vm746_vm2, %v737_v15, %v5342_v11  ;;  %v888_v24 = vld [vmem:[%s6141_s1 + $0x10] sm:$0xff] }
 0x31a   :  { %4025 = vmatpush1.bf16.msra.mxu0 %v4024_v1  ;;  %v948_v58 = vmul.f32 %v894_v60, %v769_v48  ;;  %v942_v0 = vmul.f32 %v888_v24, %v750_v2  ;;  %v901_v48 = vld [vmem:[%s6141_s1 + $0x78] sm:$0xff] }
 0x31c   :  { %v870_v21 = vpop.permute.xlu1 %869  ;;  %v5344_v9 = vpop.permute.xlu0 %759  ;;  %v4028_v60 = vpack.c.bf16 %v948_v58, %v942_v0 }
 0x31d   :  { %v768_v45 = vsel %vm765_vm3, %v758_v54, %v5344_v9  ;;  %v943_v54 = vmul.f32 %v889_v25, %v749_v55  ;;  %v5418_v55 = vld [vmem:[%s6142_s4 + $0x8] sm:$0xff] }
 0x31e   :  { %v949_v62 = vmul.f32 %v895_v16, %v768_v45 }
 0x320   :  { %v5377_v4 = vpop.permute.xlu1 %867  ;;  %v5379_v7 = vpop.permute.xlu0 %871  ;;  %v4026_v45 = vpack.c.bf16 %v949_v62, %v943_v54  ;;  %v918_v54 = vld [vmem:[%s6141_s1 + $0x100] sm:$0xff] }
 0x321   :  { %v884_v57 = vsel %vm879_vm9, %v5377_v4, %v870_v21  ;;  %v883_v1 = vsel %vm879_vm9, %v870_v21, %v5379_v7  ;;  %v900_v21 = vld [vmem:[%s6141_s1 + $0x70] sm:$0xff] }
 0x322   :  { %v988_v46 = vmul.f32 %v934_v13, %v884_v57  ;;  %v989_v43 = vmul.f32 %v935_v19, %v883_v1  ;;  %v912_v1 = vld [vmem:[%s6141_s1 + $0xd0] sm:$0xff] }
 0x324   :  { %v5392_v15 = vpop.permute.xlu1 %778  ;;  %v777_v16 = vpop.permute.xlu0 %776  ;;  %1019 = vmatprep.subr.mxu0 %v989_v43  ;;  %v906_v43 = vld [vmem:[%s6141_s1 + $0xa0] sm:$0xff] }
 0x325   :  { %1020 = vmatpush1.msra.mxu0 %v988_v46  ;;  %v787_v25 = vsel %vm784_vm4, %v777_v16, %v5392_v15  ;;  %v788_v0 = vsel %vm784_vm4, %v5249_v42, %v777_v16  ;;  %v907_v46 = vld [vmem:[%s6141_s1 + $0xa8] sm:$0xff] }
 0x326   :  { %4027 = vmatprep.subr.bf16.mxu0 %v4026_v45  ;;  %3237 = vmatmul.mubr.msk.f32.vlgmr.msra.gmra.mrb[14].mxu0 %vm996_vm10, %v5390_v50  ;;  %v954_v2 = vmul.f32 %v900_v21, %v788_v0  ;;  %v955_v62 = vmul.f32 %v901_v48, %v787_v25  ;;  %v919_v16 = vld [vmem:[%s6141_s1 + $0x108] sm:$0xff] }
 0x327   :  { %4029 = vmatpush1.bf16.msra.mxu0 %v4028_v60  ;;  %1073 = vmatprep.mubr.f32.mxu0 %v6274_v39 }
 0x328   :  { %v5420_v13 = vpop.permute.xlu1 %797  ;;  %v796_v19 = vpop.permute.xlu0 %795 }
 0x329   :  { %v806_v42 = vsel %vm803_vm5, %v796_v19, %v5420_v13  ;;  %v807_v24 = vsel %vm803_vm5, %v5262_v40, %v796_v19  ;;  %v913_v40 = vld [vmem:[%s6141_s1 + $0xd8] sm:$0xff] }
 0x32a   :  { %v960_v58 = vmul.f32 %v906_v43, %v807_v24  ;;  %v961_v57 = vmul.f32 %v907_v46, %v806_v42  ;;  %3238 = vmatmul.mubr.msk.f32.gmra.mrb[16].mxu0 %vm996_vm10, %v5418_v55  ;;  %v966_v43 = vmul.f32 %v912_v1, %v5115_v52  ;;  %v967_v42 = vmul.f32 %v913_v40, %v5117_v61  ;;  %v925_v52 = vld [vmem:[%s6141_s1 + $0x138] sm:$0xff]  ;;  %v930_v1 = vld [vmem:[%s6141_s1 + $0x160] sm:$0xff] }
 0x32b   :  { %1144 = vmatprep.mubr.f32.mxu0 %v6274_v39 }
 0x32c   :  { %v4032_v45 = vpack.c.bf16 %v960_v58, %v954_v2  ;;  %v5443_v60 = vpop.permute.xlu1 %818  ;;  %v817_v21 = vpop.permute.xlu0 %816  ;;  %v4030_v48 = vpack.c.bf16 %v961_v57, %v955_v62  ;;  %v924_v57 = vld [vmem:[%s6141_s1 + $0x130] sm:$0xff] }
 0x32d   :  { %v824_v25 = vsel %vm822_vm6, %v817_v21, %v5443_v60  ;;  %v825_v0 = vsel %vm822_vm6, %v5290_v31, %v817_v21 }
 0x32e   :  { %v972_v46 = vmul.f32 %v918_v54, %v825_v0  ;;  %v973_v19 = vmul.f32 %v919_v16, %v824_v25  ;;  %4031 = vmatprep.subr.bf16.mxu0 %v4030_v48  ;;  %v931_v54 = vld [vmem:[%s6141_s1 + $0x168] sm:$0xff] }
 0x32f   :  { %4033 = vmatpush1.bf16.msra.mxu0 %v4032_v45 }
 0x330   :  { %v4036_v24 = vpack.c.bf16 %v972_v46, %v966_v43  ;;  %v5453_v2 = vpop.permute.xlu1 %837  ;;  %v836_v62 = vpop.permute.xlu0 %835  ;;  %v4034_v58 = vpack.c.bf16 %v973_v19, %v967_v42  ;;  %v896_v46 = vld [vmem:[%s6141_s1 + $0x50] sm:$0xff] }
 0x331   :  { %v843_v31 = vsel %vm841_vm7, %v836_v62, %v5453_v2  ;;  %v844_v61 = vsel %vm841_vm7, %v5309_v5, %v836_v62  ;;  %v897_v62 = vld [vmem:[%s6141_s1 + $0x58] sm:$0xff] }
 0x332   :  { %4035 = vmatprep.subr.bf16.mxu0 %v4034_v58  ;;  %v978_v21 = vmul.f32 %v924_v57, %v844_v61  ;;  %v979_v48 = vmul.f32 %v925_v52, %v843_v31  ;;  %v890_v57 = vld [vmem:[%s6141_s1 + $0x20] sm:$0xff]  ;;  %v891_v52 = vld [vmem:[%s6141_s1 + $0x28] sm:$0xff]  ;;  %v937_v61 = vld [vmem:[%s6141_s1 + $0x198] sm:$0xff] }
 0x333   :  { %4037 = vmatpush1.bf16.msra.mxu0 %v4036_v24 }
 0x334   :  { %v5473_v16 = vpop.permute.xlu1 %856  ;;  %v855_v40 = vpop.permute.xlu0 %854 }
 0x335   :  { %v862_v45 = vsel %vm860_vm8, %v855_v40, %v5473_v16  ;;  %v863_v5 = vsel %vm860_vm8, %v5323_v20, %v855_v40 }
 0x336   :  { %v984_v25 = vmul.f32 %v930_v1, %v863_v5  ;;  %v985_v0 = vmul.f32 %v931_v54, %v862_v45 }
 0x338   :  { %v4040_v43 = vpack.c.bf16 %v984_v25, %v978_v21  ;;  %v762_v19 = vpop.permute.xlu1 %761  ;;  %v741_v42 = vpop.permute.xlu0 %740  ;;  %v4038_v24 = vpack.c.bf16 %v985_v0, %v979_v48  ;;  %v908_v0 = vld [vmem:[%s6141_s1 + $0xb0] sm:$0xff] }
 0x339   :  { %v766_v20 = vsel %vm765_vm3, %v762_v19, %v5239_v17  ;;  %v767_v58 = vsel %vm765_vm3, %v5344_v9, %v762_v19  ;;  %v747_v31 = vsel %vm746_vm2, %v741_v42, %v5241_v34  ;;  %v748_v17 = vsel %vm746_vm2, %v5342_v11, %v741_v42  ;;  %v936_v9 = vld [vmem:[%s6141_s1 + $0x190] sm:$0xff]  ;;  %v903_v19 = vld [vmem:[%s6141_s1 + $0x88] sm:$0xff] }
 0x33a   :  { %4039 = vmatprep.subr.bf16.mxu0 %v4038_v24  ;;  %v950_v1 = vmul.f32 %v896_v46, %v767_v58  ;;  %v951_v54 = vmul.f32 %v897_v62, %v766_v20  ;;  %v944_v40 = vmul.f32 %v890_v57, %v748_v17  ;;  %v945_v45 = vmul.f32 %v891_v52, %v747_v31  ;;  %v902_v46 = vld [vmem:[%s6141_s1 + $0x80] sm:$0xff] }
 0x33b   :  { %4041 = vmatpush1.bf16.msra.mxu0 %v4040_v43  ;;  %v909_v43 = vld [vmem:[%s6141_s1 + $0xb8] sm:$0xff] }
 0x33c   :  { %v5511_v5 = vpop.permute.xlu1 %875  ;;  %v874_v34 = vpop.permute.xlu0 %873  ;;  %v4044_v42 = vpack.c.bf16 %v950_v1, %v944_v40  ;;  %v4042_v62 = vpack.c.bf16 %v951_v54, %v945_v45 }
 0x33d   :  { %v881_v11 = vsel %vm879_vm9, %v874_v34, %v5511_v5  ;;  %v882_v21 = vsel %vm879_vm9, %v5379_v7, %v874_v34 }
 0x33e   :  { %v990_v48 = vmul.f32 %v936_v9, %v882_v21  ;;  %v991_v25 = vmul.f32 %v937_v61, %v881_v11  ;;  %v926_v21 = vld [vmem:[%s6141_s1 + $0x140] sm:$0xff] }
 0x340   :  { %v800_v7 = vpop.permute.xlu1 %799  ;;  %v781_v24 = vpop.permute.xlu0 %780  ;;  %1096 = vmatprep.subr.mxu0 %v991_v25 }
 0x341   :  { %v804_v20 = vsel %vm803_vm5, %v800_v7, %v5273_v44  ;;  %v805_v58 = vsel %vm803_vm5, %v5420_v13, %v800_v7  ;;  %v785_v57 = vsel %vm784_vm4, %v781_v24, %v5275_v53  ;;  %v786_v52 = vsel %vm784_vm4, %v5392_v15, %v781_v24  ;;  %1097 = vmatpush1.msra.mxu0 %v990_v48  ;;  %v914_v44 = vld [vmem:[%s6141_s1 + $0xe0] sm:$0xff]  ;;  %v920_v53 = vld [vmem:[%s6141_s1 + $0x110] sm:$0xff]  ;;  %v921_v15 = vld [vmem:[%s6141_s1 + $0x118] sm:$0xff] }
 0x342   :  { %v962_v31 = vmul.f32 %v908_v0, %v805_v58  ;;  %v963_v17 = vmul.f32 %v909_v43, %v804_v20  ;;  %v956_v9 = vmul.f32 %v902_v46, %v786_v52  ;;  %v957_v61 = vmul.f32 %v903_v19, %v785_v57  ;;  %3239 = vmatmul.mubr.msk.f32.vlgmr.msra.gmra.mrb[18].mxu0 %vm996_vm10, %v5390_v50  ;;  %v915_v13 = vld [vmem:[%s6141_s1 + $0xe8] sm:$0xff] }
 0x343   :  { %4043 = vmatprep.subr.bf16.mxu0 %v4042_v62  ;;  %1150 = vmatprep.mubr.f32.mxu0 %v6274_v39  ;;  %v968_v48 = vmul.f32 %v914_v44, %v5119_v3  ;;  %v969_v43 = vmul.f32 %v915_v13, %v5121_v56  ;;  %v932_v3 = vld [vmem:[%s6141_s1 + $0x170] sm:$0xff]  ;;  %v933_v56 = vld [vmem:[%s6141_s1 + $0x178] sm:$0xff]  ;;  %v939_v52 = vld [vmem:[%s6141_s1 + $0x1a8] sm:$0xff] }
 0x344   :  { %v4048_v1 = vpack.c.bf16 %v962_v31, %v956_v9  ;;  %4045 = vmatpush1.bf16.msra.mxu0 %v4044_v42  ;;  %v840_v54 = vpop.permute.xlu1 %839  ;;  %v821_v40 = vpop.permute.xlu0 %820  ;;  %v4046_v45 = vpack.c.bf16 %v963_v17, %v957_v61 }
 0x345   :  { %v823_v34 = vsel %vm822_vm6, %v5443_v60, %v821_v40  ;;  %v828_v11 = vsel %vm822_vm6, %v821_v40, %v5302_v29  ;;  %v927_v60 = vld [vmem:[%s6141_s1 + $0x148] sm:$0xff]  ;;  %v842_v29 = vsel %vm841_vm7, %v5453_v2, %v840_v54  ;;  %v847_v46 = vsel %vm841_vm7, %v840_v54, %v5321_v36  ;;  %v6280_v54 = vld [vmem:[#allocation36_spill] sm:$0xff]  ;;  %v6281_v40 = vld [vmem:[#allocation37_spill] sm:$0xff] }
 0x346   :  { %v974_v25 = vmul.f32 %v920_v53, %v823_v34  ;;  %v975_v0 = vmul.f32 %v921_v15, %v828_v11  ;;  %3240 = vmatmul.mubr.msk.f32.gmra.mrb[20].mxu0 %vm996_vm10, %v5418_v55  ;;  %4047 = vmatprep.subr.bf16.mxu0 %v4046_v45  ;;  %v980_v62 = vmul.f32 %v926_v21, %v842_v29  ;;  %v6282_v45 = vld [vmem:[#allocation38_spill] sm:$0xff]  ;;  %v6283_v34 = vld [vmem:[#allocation39_spill] sm:$0xff]  ;;  %v6284_v11 = vld [vmem:[#allocation40_spill] sm:$0xff] }
 0x347   :  { %1221 = vmatprep.mubr.f32.mxu0 %v6274_v39  ;;  %v981_v20 = vmul.f32 %v927_v60, %v847_v46  ;;  %v6285_v21 = vld [vmem:[#allocation41_spill] sm:$0xff]  ;;  %v6288_v60 = vld [vmem:[#allocation44_spill] sm:$0xff] }
 0x348   :  { %v4052_v19 = vpack.c.bf16 %v974_v25, %v968_v48  ;;  %4049 = vmatpush1.bf16.msra.mxu0 %v4048_v1  ;;  %v859_v42 = vpop.permute.xlu0 %858  ;;  %v4050_v7 = vpack.c.bf16 %v975_v0, %v969_v43  ;;  %v878_v2 = vpop.permute.xlu1 %877  ;;  %v6279_v1 = vld [vmem:[#allocation35_spill] sm:$0xff]  ;;  %v6286_v48 = vld [vmem:[#allocation42_spill] sm:$0xff]  ;;  %v6289_v46 = vld [vmem:[#allocation45_spill] sm:$0xff] }
 0x349   :  { %v861_v36 = vsel %vm860_vm8, %v5473_v16, %v859_v42  ;;  %v866_v24 = vsel %vm860_vm8, %v859_v42, %v5337_v28  ;;  %v885_v31 = vsel %vm879_vm9, %v878_v2, %v5377_v4  ;;  %v938_v28 = vld [vmem:[%s6141_s1 + $0x1a0] sm:$0xff]  ;;  %v880_v9 = vsel %vm879_vm9, %v5511_v5, %v878_v2  ;;  %v6287_v0 = vld [vmem:[#allocation43_spill] sm:$0xff] }
 0x34a   :  { %v986_v58 = vmul.f32 %v932_v3, %v861_v36  ;;  %v987_v57 = vmul.f32 %v933_v56, %v866_v24  ;;  %4051 = vmatprep.subr.bf16.mxu0 %v4050_v7  ;;  %v993_v61 = vmul.f32 %v939_v52, %v885_v31  ;;  %v992_v44 = vmul.f32 %v938_v28, %v880_v9 }
 0x34c   :  { %v4056_v17 = vpack.c.bf16 %v986_v58, %v980_v62  ;;  %4053 = vmatpush1.bf16.msra.mxu0 %v4052_v19  ;;  %v4054_v16 = vpack.c.bf16 %v987_v57, %v981_v20 }
 0x34e   :  { %4055 = vmatprep.subr.bf16.mxu0 %v4054_v16 }
 0x350   :  { %4057 = vmatpush1.bf16.msra.mxu0 %v4056_v17 }
 0x351   :  { %1173 = vmatprep.subr.mxu0 %v993_v61 }
 0x354   :  { %1174 = vmatpush1.msra.mxu0 %v992_v44 }
 0x355   :  { %3241 = vmatmul.mubr.msk.f32.vlgmr.msra.gmra.mrb[22].mxu0 %vm996_vm10, %v5390_v50  ;;  %4059 = vmatprep.subr.bf16.mxu0 %v4585_v14 }
 0x356   :  { %1227 = vmatprep.mubr.f32.mxu0 %v6274_v39  ;;  %4061 = vmatpush3.bf16.msra.mxu0 %v4598_v18 }
 0x357   :  { %4063 = vmatprep.subr.bf16.mxu0 %v4626_v27 }
 0x359   :  { %3242 = vmatmul.mubr.msk.f32.gmra.mrb[24].mxu0 %vm996_vm10, %v5418_v55 }
 0x35a   :  { %4065 = vmatpush3.bf16.msra.mxu0 %v4645_v33 }
 0x35b   :  { %4067 = vmatprep.subr.bf16.mxu0 %v4661_v38 }
 0x35e   :  { %4069 = vmatpush3.bf16.msra.mxu0 %v4689_v47 }
 0x35f   :  { %4071 = vmatprep.subr.bf16.mxu0 %v4701_v51 }
 0x362   :  { %4073 = vmatpush3.bf16.msra.mxu0 %v4725_v59 }
 0x363   :  { %4075 = vmatprep.subr.bf16.mxu0 %v4737_v63 }
 0x366   :  { %4077 = vmatpush3.bf16.msra.mxu0 %v4761_v8 }
 0x367   :  { %4079 = vmatprep.subr.bf16.mxu0 %v4773_v12 }
 0x36a   :  { %4081 = vmatpush3.bf16.msra.mxu0 %v4797_v23 }
 0x36b   :  { %4083 = vmatprep.subr.bf16.mxu0 %v4803_v26 }
 0x36e   :  { %4085 = vmatpush3.bf16.msra.mxu0 %v4821_v35 }
 0x36f   :  { %4087 = vmatprep.subr.bf16.mxu0 %v4825_v37 }
 0x372   :  { %4089 = vmatpush3.bf16.msra.mxu0 %v4835_v41 }
 0x373   :  { %4123 = vmatprep.subr.bf16.mxu0 %v4854_v49 }
 0x3f9   :  { %v5627_v30 = vpop.f32.mrb[14].mxu0 }
 0x3fa   :  { %v5629_v4 = vpop.f32.mrb[15].mxu0  ;;  %v1239_v53 = vmul.f32 %v5627_v30, %v5627_v30 }
 0x3fb   :  { %1315 = vmatprep.mubr.f32.mxu0 %v5629_v4  ;;  %v1240_v50 = vmul.f32 %v5629_v4, %v5629_v4 }
 0x3fc   :  { %1316 = vmatmul.mubr.f32.vlgmr.msra.gmra.mrb[26].mxu0 %v5627_v30 }
 0x3fd   :  { %v5635_v55 = vpop.f32.mrb[16].mxu0  ;;  %4125 = vmatpush3.bf16.msra.mxu0 %v4891_v6 }
 0x3fe   :  { %v5638_v5 = vpop.f32.mrb[17].mxu0  ;;  %4127 = vmatprep.subr.bf16.mxu0 %v4897_v10  ;;  %v1245_v13 = vmul.f32 %v5635_v55, %v5635_v55 }
 0x3ff   :  { %1320 = vmatprep.mubr.f32.mxu0 %v5638_v5  ;;  %v1246_v15 = vmul.f32 %v5638_v5, %v5638_v5 }
 0x400   :  { %1321 = vmatmul.mubr.f32.gmra.mrb[28].mxu0 %v5635_v55 }
 0x401   :  { %1325 = vmatprep.mubr.f32.mxu0 %v1240_v50  ;;  %4129 = vmatpush3.bf16.msra.mxu0 %v4917_v22 }
 0x402   :  { %4131 = vmatprep.subr.bf16.mxu0 %v4924_v32 }
 0x404   :  { %1326 = vmatmul.mubr.f32.gmra.mrb[30].mxu0 %v1239_v53 }
 0x405   :  { %1330 = vmatprep.mubr.f32.mxu0 %v1246_v15  ;;  %4133 = vmatpush3.bf16.msra.mxu0 %v6279_v1 }
 0x406   :  { %4135 = vmatprep.subr.bf16.mxu0 %v6280_v54 }
 0x408   :  { %1331 = vmatmul.mubr.f32.gmra.mrb[32].mxu0 %v1245_v13 }
 0x409   :  { %4137 = vmatpush3.bf16.msra.mxu0 %v6281_v40 }
 0x40a   :  { %4139 = vmatprep.subr.bf16.mxu0 %v6282_v45 }
 0x40d   :  { %4141 = vmatpush3.bf16.msra.mxu0 %v6283_v34 }
 0x40e   :  { %4143 = vmatprep.subr.bf16.mxu0 %v6284_v11 }
 0x411   :  { %4145 = vmatpush3.bf16.msra.mxu0 %v6285_v21 }
 0x412   :  { %4147 = vmatprep.subr.bf16.mxu0 %v6286_v48 }
 0x415   :  { %v5659_v25 = vpop.f32.mrb[18].mxu0  ;;  %4149 = vmatpush3.bf16.msra.mxu0 %v6287_v0 }
 0x416   :  { %v5662_v43 = vpop.f32.mrb[19].mxu0  ;;  %4151 = vmatprep.subr.bf16.mxu0 %v6288_v60  ;;  %v1241_v42 = vmul.f32 %v5659_v25, %v5659_v25 }
 0x417   :  { %1400 = vmatprep.mubr.f32.mxu1 %v5662_v43  ;;  %v1242_v56 = vmul.f32 %v5662_v43, %v5662_v43 }
 0x418   :  { %1401 = vmatmul.mubr.f32.vlgmr.msra.gmra.mrb[22].mxu1 %v5659_v25 }
 0x419   :  { %v5667_v29 = vpop.f32.mrb[20].mxu0  ;;  %4153 = vmatpush3.bf16.msra.mxu0 %v6289_v46 }
 0x41a   :  { %v5670_v3 = vpop.f32.mrb[21].mxu0  ;;  %4155 = vmatprep.subr.bf16.mxu0 %v4585_v14  ;;  %v1247_v7 = vmul.f32 %v5667_v29, %v5667_v29 }
 0x41b   :  { %1405 = vmatprep.mubr.f32.mxu1 %v5670_v3  ;;  %v1248_v19 = vmul.f32 %v5670_v3, %v5670_v3 }
 0x41c   :  { %1406 = vmatmul.mubr.f32.gmra.mrb[24].mxu1 %v5667_v29 }
 0x41d   :  { %1410 = vmatprep.mubr.f32.mxu1 %v1242_v56 }
 0x420   :  { %1411 = vmatmul.mubr.f32.gmra.mrb[26].mxu1 %v1241_v42 }
 0x421   :  { %1415 = vmatprep.mubr.f32.mxu1 %v1248_v19 }
 0x424   :  { %1416 = vmatmul.mubr.f32.gmra.mrb[28].mxu1 %v1247_v7 }
 0x425   :  { %1647 = vmatprep.mubr.f32.mxu1 %v6274_v39 }
 0x428   :  { %v5684_v2 = vpop.f32.mrb[22].mxu0 }
 0x429   :  { %v5686_v36 = vpop.f32.mrb[23].mxu0  ;;  %v1243_v58 = vmul.f32 %v5684_v2, %v5684_v2 }
 0x42a   :  { %1485 = vmatprep.mubr.f32.mxu0 %v5686_v36  ;;  %v1244_v20 = vmul.f32 %v5686_v36, %v5686_v36 }
 0x42b   :  { %1486 = vmatmul.mubr.f32.vlgmr.msra.gmra.mrb[34].mxu0 %v5684_v2 }
 0x42c   :  { %v5690_v24 = vpop.f32.mrb[24].mxu0  ;;  %4157 = vmatpush3.bf16.msra.mxu0 %v4598_v18 }
 0x42d   :  { %v5693_v62 = vpop.f32.mrb[25].mxu0  ;;  %4159 = vmatprep.subr.bf16.mxu0 %v4626_v27  ;;  %v1249_v52 = vmul.f32 %v5690_v24, %v5690_v24 }
 0x42e   :  { %1490 = vmatprep.mubr.f32.mxu0 %v5693_v62  ;;  %v1250_v57 = vmul.f32 %v5693_v62, %v5693_v62 }
 0x42f   :  { %1491 = vmatmul.mubr.f32.gmra.mrb[36].mxu0 %v5690_v24 }
 0x430   :  { %1495 = vmatprep.mubr.f32.mxu0 %v1244_v20  ;;  %4161 = vmatpush3.bf16.msra.mxu0 %v4645_v33 }
 0x431   :  { %4163 = vmatprep.subr.bf16.mxu0 %v4661_v38 }
 0x433   :  { %1496 = vmatmul.mubr.f32.gmra.mrb[38].mxu0 %v1243_v58 }
 0x434   :  { %1500 = vmatprep.mubr.f32.mxu0 %v1250_v57  ;;  %4165 = vmatpush3.bf16.msra.mxu0 %v4689_v47 }
 0x435   :  { %4167 = vmatprep.subr.bf16.mxu0 %v4701_v51 }
 0x437   :  { %1501 = vmatmul.mubr.f32.gmra.mrb[40].mxu0 %v1249_v52 }
 0x438   :  { %4169 = vmatpush3.bf16.msra.mxu0 %v4725_v59 }
 0x439   :  { %4171 = vmatprep.subr.bf16.mxu0 %v4737_v63 }
 0x43c   :  { %4173 = vmatpush3.bf16.msra.mxu0 %v4761_v8 }
 0x43d   :  { %4175 = vmatprep.subr.bf16.mxu0 %v4773_v12 }
 0x440   :  { %4177 = vmatpush3.bf16.msra.mxu0 %v4797_v23 }
 0x441   :  { %4179 = vmatprep.subr.bf16.mxu0 %v4803_v26 }
 0x444   :  { %4181 = vmatpush3.bf16.msra.mxu0 %v4821_v35 }
 0x445   :  { %4183 = vmatprep.subr.bf16.mxu0 %v4825_v37 }
 0x448   :  { %4185 = vmatpush3.bf16.msra.mxu0 %v4835_v41 }
 0x449   :  { %4219 = vmatprep.subr.bf16.mxu0 %v4854_v49 }
 0x4cf   :  { %v3436_v31 = vpop.f32.mrb[26].mxu0 }
 0x4d0   :  { %v3437_v17 = vpop.f32.mrb[27].mxu0 }
 0x4d1   :  { %v3438_v16 = vadd.f32 %v3437_v17, %v3436_v31 }
 0x4d3   :  { %v3439_v28 = vpop.f32.mrb[28].mxu0 }
 0x4d4   :  { %v3440_v9 = vpop.f32.mrb[29].mxu0 }
 0x4d5   :  { %v3441_v61 = vadd.f32 %v3440_v9, %v3439_v28 }
 0x4d7   :  { %v3442_v44 = vpop.f32.mrb[30].mxu0 }
 0x4d8   :  { %v3443_v50 = vpop.f32.mrb[31].mxu0 }
 0x4d9   :  { %v3444_v53 = vadd.f32 %v3443_v50, %v3442_v44 }
 0x4db   :  { %v3445_v15 = vpop.f32.mrb[32].mxu0 }
 0x4dc   :  { %v3446_v13 = vpop.f32.mrb[33].mxu0 }
 0x4dd   :  { %v3447_v56 = vadd.f32 %v3446_v13, %v3445_v15 }
 0x4eb   :  { %v3480_v19 = vpop.f32.mrb[22].mxu1 }
 0x4ec   :  { %v3481_v42 = vpop.f32.mrb[23].mxu1 }
 0x4ed   :  { %v3482_v7 = vadd.f32 %v3481_v42, %v3480_v19 }
 0x4ef   :  { %v1403_v20 = vadd.f32 %v3482_v7, %v3438_v16  ;;  %v3483_v58 = vpop.f32.mrb[24].mxu1 }
 0x4f0   :  { %v3484_v57 = vpop.f32.mrb[25].mxu1 }
 0x4f1   :  { %v3485_v52 = vadd.f32 %v3484_v57, %v3483_v58 }
 0x4f3   :  { %v1408_v49 = vadd.f32 %v3485_v52, %v3441_v61  ;;  %v3486_v41 = vpop.f32.mrb[26].mxu1 }
 0x4f4   :  { %v3487_v37 = vpop.f32.mrb[27].mxu1 }
 0x4f5   :  { %v3488_v31 = vadd.f32 %v3487_v37, %v3486_v41 }
 0x4f7   :  { %v1413_v17 = vadd.f32 %v3488_v31, %v3444_v53  ;;  %v3489_v35 = vpop.f32.mrb[28].mxu1 }
 0x4f8   :  { %v3490_v28 = vpop.f32.mrb[29].mxu1 }
 0x4f9   :  { %v3491_v9 = vadd.f32 %v3490_v28, %v3489_v35 }
 0x4fb   :  { %v1418_v26 = vadd.f32 %v3491_v9, %v3447_v56 }
 0x4fe   :  { %v3524_v44 = vpop.f32.mrb[34].mxu0 }
 0x4ff   :  { %v3525_v50 = vpop.f32.mrb[35].mxu0 }
 0x500   :  { %v3526_v23 = vadd.f32 %v3525_v50, %v3524_v44 }
 0x502   :  { %v1488_v15 = vadd.f32 %v3526_v23, %v1403_v20  ;;  %v3527_v13 = vpop.f32.mrb[36].mxu0 }
 0x503   :  { %v3528_v12 = vpop.f32.mrb[37].mxu0 }
 0x504   :  { %v3529_v19 = vadd.f32 %v3528_v12, %v3527_v13  ;;  %v1506_v58 = vmul.f32 0.0015432099, %v1488_v15  ;;  %v3245_v15 = vld [vmem:[%s6140_s7 + $0x30] sm:$0xff] }
 0x506   :  { %v1493_v16 = vadd.f32 %v3529_v19, %v1408_v49  ;;  %v3530_v42 = vpop.f32.mrb[38].mxu0  ;;  %v1510_v41 = vmul.f32 %v1506_v58, %v1506_v58  ;;  %v3243_v49 = vld [vmem:[%s6140_s7 + $0x20] sm:$0xff] }
 0x507   :  { %v3531_v7 = vpop.f32.mrb[39].mxu0 }
 0x508   :  { %v3532_v61 = vadd.f32 %v3531_v7, %v3530_v42  ;;  %v1507_v53 = vmul.f32 0.0015432099, %v1493_v16  ;;  %v3246_v7 = vld [vmem:[%s6140_s7 + $0x38] sm:$0xff] }
 0x50a   :  { %v1498_v57 = vadd.f32 %v3532_v61, %v1413_v17  ;;  %v3533_v52 = vpop.f32.mrb[40].mxu0  ;;  %v1511_v9 = vmul.f32 %v1507_v53, %v1507_v53 }
 0x50b   :  { %v3534_v37 = vpop.f32.mrb[41].mxu0 }
 0x50c   :  { %v1508_v31 = vmul.f32 0.0015432099, %v1498_v57  ;;  %v3535_v35 = vadd.f32 %v3534_v37, %v3533_v52 }
 0x50e   :  { %v1512_v56 = vsub.f32 %v1508_v31, %v1510_v41  ;;  %v1503_v28 = vadd.f32 %v3535_v35, %v1418_v26  ;;  %v3244_v26 = vld [vmem:[%s6140_s7 + $0x28] sm:$0xff] }
 0x510   :  { %v1514_v44 = vadd.f32 1e-05, %v1512_v56  ;;  %v1509_v23 = vmul.f32 0.0015432099, %v1503_v28 }
 0x512   :  { %4460 = vrsqrt.f32 %v1514_v44  ;;  %v1513_v20 = vsub.f32 %v1509_v23, %v1511_v9 }
 0x514   :  { %v1515_v12 = vadd.f32 1e-05, %v1513_v20 }
 0x516   :  { %4462 = vrsqrt.f32 %v1515_v12 }
 0x51c   :  { %v4461_v17 = vpop.eup %4460 }
 0x51d   :  { %v1518_v50 = vmul.f32 %v4461_v17, %v3243_v49 }
 0x51f   :  { %1522 = vperm.xlu0 %4454, %v1518_v50   ;;  %v1542_v13 = vmul.f32 %v1518_v50, %v1506_v58 }
 0x520   :  { %v4463_v19 = vpop.eup %4462 }
 0x521   :  { %v1544_v16 = vsub.f32 %v3245_v15, %v1542_v13  ;;  %v1519_v42 = vmul.f32 %v4463_v19, %v3244_v26 }
 0x523   :  { %1548 = vperm.xlu0 %4454, %v1544_v16   ;;  %1527 = vperm.xlu1 %4455, %v1519_v42   ;;  %v1543_v61 = vmul.f32 %v1519_v42, %v1507_v53 }
 0x525   :  { %v1545_v57 = vsub.f32 %v3246_v7, %v1543_v61  ;;  %v6290_v61 = vld [vmem:[#allocation4_spill] sm:$0xff] }
 0x527   :  { %1553 = vperm.xlu1 %4455, %v1545_v57   ;;  %v6291_v57 = vld [vmem:[#allocation5_spill] sm:$0xff] }
 0x59e   :  { %v1523_v52 = vpop.permute.xlu0 %1522 }
 0x59f   :  { %v1531_v31 = vmul.f32 %v1523_v52, %v5629_v4  ;;  %v1530_v35 = vmul.f32 %v1523_v52, %v5627_v30  ;;  %v1533_v58 = vmul.f32 %v1523_v52, %v5662_v43  ;;  %v1532_v56 = vmul.f32 %v1523_v52, %v5659_v25 }
 0x5a0   :  { %v1535_v44 = vmul.f32 %v1523_v52, %v5686_v36  ;;  %v1534_v53 = vmul.f32 %v1523_v52, %v5684_v2  ;;  %v6292_v52 = vld [vmem:[#allocation7_spill] sm:$0xff] }
 0x5a2   :  { %v1549_v37 = vpop.permute.xlu0 %1548  ;;  %v1528_v41 = vpop.permute.xlu1 %1527 }
 0x5a3   :  { %v1537_v28 = vmul.f32 %v1528_v41, %v5638_v5  ;;  %v1557_v9 = vadd.f32 %v1549_v37, %v1531_v31  ;;  %v1536_v23 = vmul.f32 %v1528_v41, %v5635_v55  ;;  %v1556_v20 = vadd.f32 %v1549_v37, %v1530_v35  ;;  %v6295_v31 = vld [vmem:[#allocation13_spill] sm:$0xff]  ;;  %v6296_v35 = vld [vmem:[#allocation15_spill] sm:$0xff] }
 0x5a4   :  { %v1539_v12 = vmul.f32 %v1528_v41, %v5670_v3  ;;  %v1538_v4 = vmul.f32 %v1528_v41, %v5667_v29  ;;  %v1559_v30 = vadd.f32 %v1549_v37, %v1533_v58  ;;  %v1558_v17 = vadd.f32 %v1549_v37, %v1532_v56  ;;  %v1574_v29 = vld [vmem:[%s6143_s5] sm:$0xff]  ;;  %v6297_v58 = vld [vmem:[#allocation17_spill] sm:$0xff]  ;;  %v6298_v56 = vld [vmem:[#allocation19_spill] sm:$0xff] }
 0x5a5   :  { %v1541_v43 = vmul.f32 %v1528_v41, %v5693_v62  ;;  %v1540_v25 = vmul.f32 %v1528_v41, %v5690_v24  ;;  %v1561_v26 = vadd.f32 %v1549_v37, %v1535_v44  ;;  %v1560_v13 = vadd.f32 %v1549_v37, %v1534_v53  ;;  %v1575_v24 = vld [vmem:[%s6143_s5 + $0x8] sm:$0xff]  ;;  %v6293_v37 = vld [vmem:[#allocation9_spill] sm:$0xff] }
 0x5a6   :  { %v1554_v49 = vpop.permute.xlu1 %1553  ;;  %v6294_v41 = vld [vmem:[#allocation11_spill] sm:$0xff]  ;;  %v6301_v44 = vld [vmem:[#allocation25_spill] sm:$0xff] }
 0x5a7   :  { %v1563_v5 = vadd.f32 %v1554_v49, %v1537_v28  ;;  %v1562_v50 = vadd.f32 %v1554_v49, %v1536_v23  ;;  %v1565_v15 = vadd.f32 %v1554_v49, %v1539_v12  ;;  %v1564_v36 = vadd.f32 %v1554_v49, %v1538_v4  ;;  %v6299_v28 = vld [vmem:[#allocation21_spill] sm:$0xff]  ;;  %v6302_v53 = vld [vmem:[#allocation27_spill] sm:$0xff]  ;;  %v6305_v12 = vld [vmem:[#allocation34_spill] sm:$0xff] }
 0x5a8   :  { %v1567_v2 = vadd.f32 %v1554_v49, %v1541_v43  ;;  %v1566_v55 = vadd.f32 %v1554_v49, %v1540_v25  ;;  %v6303_v23 = vld [vmem:[#allocation31_spill] sm:$0xff] }
 0x5a9   :  { %v1569_v19 = vadd.f32 %v1563_v5, %v1557_v9  ;;  %v1568_v16 = vadd.f32 %v1562_v50, %v1556_v20  ;;  %v1571_v3 = vadd.f32 %v1565_v15, %v1559_v30  ;;  %v1570_v42 = vadd.f32 %v1564_v36, %v1558_v17  ;;  %v6300_v9 = vld [vmem:[#allocation23_spill] sm:$0xff]  ;;  %v6304_v20 = vld [vmem:[#allocation33_spill] sm:$0xff] }
 0x5aa   :  { %v1573_v62 = vadd.f32 %v1567_v2, %v1561_v26  ;;  %v1572_v7 = vadd.f32 %v1566_v55, %v1560_v13 }
 0x5ab   :  { %1583 = vmatprep.subr.mxu1 %v1569_v19 }
 0x5ac   :  { %1584 = vmatpush1.msra.mxu1 %v1568_v16 }
 0x5ad   :  { %3247 = vmatmul.mubr.msk.f32.vlgmr.msra.gmra.mrb[30].mxu1 %vm1576_vm11, %v1574_v29  ;;  %1660 = vmatprep.subr.mxu1 %v1571_v3 }
 0x5ae   :  { %1661 = vmatpush1.msra.mxu1 %v1570_v42  ;;  %1653 = vmatprep.mubr.f32.mxu1 %v6274_v39 }
 0x5af   :  { %1737 = vmatprep.subr.mxu1 %v1573_v62 }
 0x5b1   :  { %3248 = vmatmul.mubr.msk.f32.gmra.mrb[32].mxu1 %vm1576_vm11, %v1575_v24 }
 0x5b2   :  { %1724 = vmatprep.mubr.f32.mxu1 %v6274_v39 }
 0x5b5   :  { %3249 = vmatmul.mubr.msk.f32.vlgmr.msra.gmra.mrb[34].mxu1 %vm1576_vm11, %v1574_v29 }
 0x5b6   :  { %1738 = vmatpush1.msra.mxu1 %v1572_v7  ;;  %1730 = vmatprep.mubr.f32.mxu1 %v6274_v39 }
 0x5b7   :  { %4187 = vmatprep.subr.bf16.mxu1 %v6290_v61 }
 0x5b9   :  { %3250 = vmatmul.mubr.msk.f32.gmra.mrb[36].mxu1 %vm1576_vm11, %v1575_v24 }
 0x5ba   :  { %1801 = vmatprep.mubr.f32.mxu1 %v6274_v39 }
 0x5bd   :  { %3251 = vmatmul.mubr.msk.f32.vlgmr.msra.gmra.mrb[38].mxu1 %vm1576_vm11, %v1574_v29 }
 0x5be   :  { %1807 = vmatprep.mubr.f32.mxu1 %v6274_v39  ;;  %4189 = vmatpush3.bf16.msra.mxu1 %v6291_v57 }
 0x5bf   :  { %4191 = vmatprep.subr.bf16.mxu1 %v6292_v52 }
 0x5c1   :  { %3252 = vmatmul.mubr.msk.f32.gmra.mrb[40].mxu1 %vm1576_vm11, %v1575_v24 }
 0x5c2   :  { %4193 = vmatpush3.bf16.msra.mxu1 %v6293_v37 }
 0x5c3   :  { %4195 = vmatprep.subr.bf16.mxu1 %v6294_v41 }
 0x5c6   :  { %4197 = vmatpush3.bf16.msra.mxu1 %v6295_v31 }
 0x5c7   :  { %4199 = vmatprep.subr.bf16.mxu1 %v6296_v35 }
 0x5ca   :  { %4201 = vmatpush3.bf16.msra.mxu1 %v6297_v58 }
 0x5cb   :  { %4203 = vmatprep.subr.bf16.mxu1 %v6298_v56 }
 0x5ce   :  { %4205 = vmatpush3.bf16.msra.mxu1 %v6299_v28 }
 0x5cf   :  { %4207 = vmatprep.subr.bf16.mxu1 %v6300_v9 }
 0x5d2   :  { %4209 = vmatpush3.bf16.msra.mxu1 %v6301_v44 }
 0x5d3   :  { %4211 = vmatprep.subr.bf16.mxu1 %v6302_v53 }
 0x5d6   :  { %4213 = vmatpush3.bf16.msra.mxu1 %v6303_v23 }
 0x5d7   :  { %4215 = vmatprep.subr.bf16.mxu1 %v6304_v20 }
 0x5da   :  { %4217 = vmatpush3.bf16.msra.mxu1 %v6305_v12 }
 0x680   :  { %v5777_v4 = vpop.f32.mrb[30].mxu1 }
 0x681   :  { %v5779_v49 = vpop.f32.mrb[31].mxu1  ;;  %v1819_v50 = vmul.f32 %v5777_v4, %v5777_v4 }
 0x682   :  { %1895 = vmatprep.mubr.f32.mxu0 %v5779_v49  ;;  %v1820_v43 = vmul.f32 %v5779_v49, %v5779_v49 }
 0x683   :  { %1896 = vmatmul.mubr.f32.vlgmr.msra.gmra.mrb[42].mxu0 %v5777_v4 }
 0x684   :  { %4221 = vmatpush3.bf16.msra.mxu0 %v4891_v6  ;;  %v5784_v30 = vpop.f32.mrb[32].mxu1 }
 0x685   :  { %v5786_v17 = vpop.f32.mrb[33].mxu1  ;;  %4223 = vmatprep.subr.bf16.mxu0 %v4897_v10  ;;  %v1825_v36 = vmul.f32 %v5784_v30, %v5784_v30 }
 0x686   :  { %1900 = vmatprep.mubr.f32.mxu0 %v5786_v17  ;;  %v1826_v25 = vmul.f32 %v5786_v17, %v5786_v17 }
 0x687   :  { %1901 = vmatmul.mubr.f32.gmra.mrb[44].mxu0 %v5784_v30 }
 0x688   :  { %4225 = vmatpush3.bf16.msra.mxu0 %v4917_v22  ;;  %v5796_v5 = vpop.f32.mrb[34].mxu1  ;;  %1905 = vmatprep.mubr.f32.mxu0 %v1820_v43 }
 0x689   :  { %v5800_v15 = vpop.f32.mrb[35].mxu1  ;;  %4227 = vmatprep.subr.bf16.mxu0 %v4924_v32  ;;  %v1821_v55 = vmul.f32 %v5796_v5, %v5796_v5 }
 0x68a   :  { %1980 = vmatprep.mubr.f32.mxu1 %v5800_v15  ;;  %v1822_v26 = vmul.f32 %v5800_v15, %v5800_v15 }
 0x68b   :  { %1906 = vmatmul.mubr.f32.gmra.mrb[46].mxu0 %v1819_v50  ;;  %1981 = vmatmul.mubr.f32.vlgmr.msra.gmra.mrb[42].mxu1 %v5796_v5  ;;  %v6306_v50 = vld [vmem:[#allocation22_spill] sm:$0xff] }
 0x68c   :  { %4229 = vmatpush3.bf16.msra.mxu0 %v6279_v1  ;;  %v5810_v2 = vpop.f32.mrb[36].mxu1  ;;  %1910 = vmatprep.mubr.f32.mxu0 %v1826_v25 }
 0x68d   :  { %v5812_v13 = vpop.f32.mrb[37].mxu1  ;;  %4231 = vmatprep.subr.bf16.mxu0 %v6280_v54  ;;  %v1827_v42 = vmul.f32 %v5810_v2, %v5810_v2 }
 0x68e   :  { %1985 = vmatprep.mubr.f32.mxu1 %v5812_v13  ;;  %v1828_v19 = vmul.f32 %v5812_v13, %v5812_v13 }
 0x68f   :  { %1986 = vmatmul.mubr.f32.gmra.mrb[44].mxu1 %v5810_v2  ;;  %1911 = vmatmul.mubr.f32.gmra.mrb[48].mxu0 %v1825_v36  ;;  %v6307_v36 = vld [vmem:[#allocation24_spill] sm:$0xff] }
 0x690   :  { %4233 = vmatpush3.bf16.msra.mxu0 %v6281_v40  ;;  %1990 = vmatprep.mubr.f32.mxu1 %v1822_v26  ;;  %v5822_v16 = vpop.f32.mrb[38].mxu1  ;;  %v6308_v26 = vld [vmem:[#allocation26_spill] sm:$0xff] }
 0x691   :  { %4235 = vmatprep.subr.bf16.mxu0 %v6282_v45  ;;  %v5825_v3 = vpop.f32.mrb[39].mxu1  ;;  %v1823_v24 = vmul.f32 %v5822_v16, %v5822_v16 }
 0x692   :  { %2065 = vmatprep.mubr.f32.mxu0 %v5825_v3  ;;  %v1824_v7 = vmul.f32 %v5825_v3, %v5825_v3 }
 0x693   :  { %1991 = vmatmul.mubr.f32.gmra.mrb[46].mxu1 %v1821_v55  ;;  %v6309_v55 = vld [vmem:[#allocation28_spill] sm:$0xff] }
 0x694   :  { %4237 = vmatpush3.bf16.msra.mxu0 %v6283_v34  ;;  %1995 = vmatprep.mubr.f32.mxu1 %v1828_v19  ;;  %v5831_v29 = vpop.f32.mrb[40].mxu1  ;;  %v6310_v19 = vld [vmem:[#allocation29_spill] sm:$0xff] }
 0x695   :  { %4239 = vmatprep.subr.bf16.mxu0 %v6284_v11  ;;  %v5834_v62 = vpop.f32.mrb[41].mxu1  ;;  %v1829_v25 = vmul.f32 %v5831_v29, %v5831_v29 }
 0x696   :  { %v1830_v43 = vmul.f32 %v5834_v62, %v5834_v62 }
 0x697   :  { %1996 = vmatmul.mubr.f32.gmra.mrb[48].mxu1 %v1827_v42  ;;  %v6311_v42 = vld [vmem:[#allocation30_spill] sm:$0xff] }
 0x698   :  { %4241 = vmatpush3.bf16.msra.mxu0 %v6285_v21  ;;  %2227 = vmatprep.mubr.f32.mxu1 %v6274_v39 }
 0x699   :  { %4243 = vmatprep.subr.bf16.mxu0 %v6286_v48 }
 0x69c   :  { %4245 = vmatpush3.bf16.msra.mxu0 %v6287_v0 }
 0x69d   :  { %4247 = vmatprep.subr.bf16.mxu0 %v6288_v60 }
 0x6a0   :  { %4249 = vmatpush3.bf16.msra.mxu0 %v6289_v46 }
 0x6a1   :  { %4251 = vmatprep.subr.bf16.mxu0 %v4585_v14 }
 0x6a3   :  { %2066 = vmatmul.mubr.f32.vlgmr.msra.gmra.mrb[50].mxu0 %v5822_v16 }
 0x6a4   :  { %2070 = vmatprep.mubr.f32.mxu0 %v5834_v62  ;;  %4253 = vmatpush3.bf16.msra.mxu0 %v4598_v18 }
 0x6a5   :  { %4255 = vmatprep.subr.bf16.mxu0 %v4626_v27 }
 0x6a7   :  { %2071 = vmatmul.mubr.f32.gmra.mrb[52].mxu0 %v5831_v29 }
 0x6a8   :  { %2075 = vmatprep.mubr.f32.mxu0 %v1824_v7  ;;  %4257 = vmatpush3.bf16.msra.mxu0 %v4645_v33  ;;  %v6312_v7 = vld [vmem:[#allocation32_spill] sm:$0xff] }
 0x6a9   :  { %4259 = vmatprep.subr.bf16.mxu0 %v4661_v38 }
 0x6ab   :  { %2076 = vmatmul.mubr.f32.gmra.mrb[54].mxu0 %v1823_v24 }
 0x6ac   :  { %2080 = vmatprep.mubr.f32.mxu0 %v1830_v43  ;;  %4261 = vmatpush3.bf16.msra.mxu0 %v4689_v47 }
 0x6ad   :  { %4263 = vmatprep.subr.bf16.mxu0 %v4701_v51 }
 0x6af   :  { %2081 = vmatmul.mubr.f32.gmra.mrb[56].mxu0 %v1829_v25 }
 0x6b0   :  { %4265 = vmatpush3.bf16.msra.mxu0 %v4725_v59 }
 0x6b1   :  { %4267 = vmatprep.subr.bf16.mxu0 %v4737_v63 }
 0x6b4   :  { %4269 = vmatpush3.bf16.msra.mxu0 %v4761_v8 }
 0x6b5   :  { %4271 = vmatprep.subr.bf16.mxu0 %v6306_v50 }
 0x6b8   :  { %4273 = vmatpush3.bf16.msra.mxu0 %v6307_v36 }
 0x6b9   :  { %4275 = vmatprep.subr.bf16.mxu0 %v6308_v26 }
 0x6bc   :  { %4277 = vmatpush3.bf16.msra.mxu0 %v6309_v55 }
 0x6bd   :  { %4279 = vmatprep.subr.bf16.mxu0 %v6310_v19 }
 0x6c0   :  { %4281 = vmatpush3.bf16.msra.mxu0 %v6311_v42 }
 0x6c1   :  { %4315 = vmatprep.subr.bf16.mxu0 %v6312_v7 }
 0x756   :  { %v3568_v24 = vpop.f32.mrb[42].mxu0 }
 0x757   :  { %v3569_v43 = vpop.f32.mrb[43].mxu0 }
 0x758   :  { %v3570_v25 = vadd.f32 %v3569_v43, %v3568_v24 }
 0x75a   :  { %v3571_v63 = vpop.f32.mrb[44].mxu0 }
 0x75b   :  { %v3572_v59 = vpop.f32.mrb[45].mxu0 }
 0x75c   :  { %v3573_v8 = vadd.f32 %v3572_v59, %v3571_v63 }
 0x75e   :  { %v3574_v51 = vpop.f32.mrb[46].mxu0  ;;  %v3612_v50 = vpop.f32.mrb[42].mxu1 }
 0x75f   :  { %v3575_v47 = vpop.f32.mrb[47].mxu0  ;;  %v3613_v36 = vpop.f32.mrb[43].mxu1 }
 0x760   :  { %v3576_v38 = vadd.f32 %v3575_v47, %v3574_v51  ;;  %v3614_v26 = vadd.f32 %v3613_v36, %v3612_v50 }
 0x762   :  { %v1983_v33 = vadd.f32 %v3614_v26, %v3570_v25  ;;  %v3615_v55 = vpop.f32.mrb[44].mxu1  ;;  %v3577_v27 = vpop.f32.mrb[48].mxu0 }
 0x763   :  { %v3616_v19 = vpop.f32.mrb[45].mxu1  ;;  %v3578_v18 = vpop.f32.mrb[49].mxu0 }
 0x764   :  { %v3617_v42 = vadd.f32 %v3616_v19, %v3615_v55  ;;  %v3579_v14 = vadd.f32 %v3578_v18, %v3577_v27 }
 0x766   :  { %v1988_v7 = vadd.f32 %v3617_v42, %v3573_v8  ;;  %v3618_v46 = vpop.f32.mrb[46].mxu1 }
 0x767   :  { %v3619_v60 = vpop.f32.mrb[47].mxu1 }
 0x768   :  { %v3620_v24 = vadd.f32 %v3619_v60, %v3618_v46 }
 0x76a   :  { %v1993_v43 = vadd.f32 %v3620_v24, %v3576_v38  ;;  %v3621_v0 = vpop.f32.mrb[48].mxu1 }
 0x76b   :  { %v3622_v59 = vpop.f32.mrb[49].mxu1 }
 0x76c   :  { %v3623_v63 = vadd.f32 %v3622_v59, %v3621_v0 }
 0x76e   :  { %v1998_v48 = vadd.f32 %v3623_v63, %v3579_v14 }
 0x776   :  { %v3656_v21 = vpop.f32.mrb[50].mxu0 }
 0x777   :  { %v3657_v11 = vpop.f32.mrb[51].mxu0 }
 0x778   :  { %v3658_v47 = vadd.f32 %v3657_v11, %v3656_v21 }
 0x77a   :  { %v2068_v51 = vadd.f32 %v3658_v47, %v1983_v33  ;;  %v3659_v50 = vpop.f32.mrb[52].mxu0  ;;  %v3255_v47 = vld [vmem:[%s6140_s7 + $0x50] sm:$0xff] }
 0x77b   :  { %v3660_v36 = vpop.f32.mrb[53].mxu0 }
 0x77c   :  { %v3661_v26 = vadd.f32 %v3660_v36, %v3659_v50  ;;  %v2086_v18 = vmul.f32 0.0015432099, %v2068_v51 }
 0x77e   :  { %v2073_v25 = vadd.f32 %v3661_v26, %v1988_v7  ;;  %v3662_v34 = vpop.f32.mrb[54].mxu0  ;;  %v2090_v38 = vmul.f32 %v2086_v18, %v2086_v18 }
 0x77f   :  { %v3663_v55 = vpop.f32.mrb[55].mxu0 }
 0x780   :  { %v3664_v27 = vadd.f32 %v3663_v55, %v3662_v34  ;;  %v2087_v46 = vmul.f32 0.0015432099, %v2073_v25  ;;  %v3253_v34 = vld [vmem:[%s6140_s7 + $0x40] sm:$0xff]  ;;  %v3256_v25 = vld [vmem:[%s6140_s7 + $0x58] sm:$0xff] }
 0x782   :  { %v2078_v8 = vadd.f32 %v3664_v27, %v1993_v43  ;;  %v3665_v19 = vpop.f32.mrb[56].mxu0  ;;  %v2091_v59 = vmul.f32 %v2087_v46, %v2087_v46 }
 0x783   :  { %v3666_v60 = vpop.f32.mrb[57].mxu0 }
 0x784   :  { %v2088_v42 = vmul.f32 0.0015432099, %v2078_v8  ;;  %v3667_v0 = vadd.f32 %v3666_v60, %v3665_v19 }
 0x786   :  { %v2092_v14 = vsub.f32 %v2088_v42, %v2090_v38  ;;  %v2083_v24 = vadd.f32 %v3667_v0, %v1998_v48  ;;  %v3254_v48 = vld [vmem:[%s6140_s7 + $0x48] sm:$0xff] }
 0x788   :  { %v2094_v11 = vadd.f32 1e-05, %v2092_v14  ;;  %v2089_v33 = vmul.f32 0.0015432099, %v2083_v24 }
 0x78a   :  { %4464 = vrsqrt.f32 %v2094_v11  ;;  %v2093_v21 = vsub.f32 %v2089_v33, %v2091_v59 }
 0x78c   :  { %v2095_v63 = vadd.f32 1e-05, %v2093_v21 }
 0x78e   :  { %4466 = vrsqrt.f32 %v2095_v63 }
 0x794   :  { %v4465_v7 = vpop.eup %4464 }
 0x795   :  { %v2098_v43 = vmul.f32 %v4465_v7, %v3253_v34 }
 0x797   :  { %2102 = vperm.xlu0 %4454, %v2098_v43   ;;  %v2122_v51 = vmul.f32 %v2098_v43, %v2086_v18 }
 0x798   :  { %v4467_v50 = vpop.eup %4466 }
 0x799   :  { %v2124_v36 = vsub.f32 %v3255_v47, %v2122_v51  ;;  %v2099_v26 = vmul.f32 %v4467_v50, %v3254_v48 }
 0x79b   :  { %2128 = vperm.xlu0 %4454, %v2124_v36   ;;  %2107 = vperm.xlu1 %4455, %v2099_v26   ;;  %v2123_v55 = vmul.f32 %v2099_v26, %v2087_v46 }
 0x79d   :  { %v2125_v27 = vsub.f32 %v3256_v25, %v2123_v55 }
 0x79f   :  { %2133 = vperm.xlu1 %4455, %v2125_v27  }
 0x816   :  { %v2103_v8 = vpop.permute.xlu0 %2102 }
 0x817   :  { %v2111_v38 = vmul.f32 %v2103_v8, %v5779_v49  ;;  %v2110_v42 = vmul.f32 %v2103_v8, %v5777_v4  ;;  %v2113_v18 = vmul.f32 %v2103_v8, %v5800_v15  ;;  %v2112_v0 = vmul.f32 %v2103_v8, %v5796_v5 }
 0x818   :  { %v2115_v59 = vmul.f32 %v2103_v8, %v5825_v3  ;;  %v2114_v46 = vmul.f32 %v2103_v8, %v5822_v16 }
 0x81a   :  { %v2129_v19 = vpop.permute.xlu0 %2128  ;;  %v2108_v60 = vpop.permute.xlu1 %2107 }
 0x81b   :  { %v2117_v14 = vmul.f32 %v2108_v60, %v5786_v17  ;;  %v2137_v24 = vadd.f32 %v2129_v19, %v2111_v38  ;;  %v2116_v11 = vmul.f32 %v2108_v60, %v5784_v30  ;;  %v2136_v33 = vadd.f32 %v2129_v19, %v2110_v42 }
 0x81c   :  { %v2119_v21 = vmul.f32 %v2108_v60, %v5812_v13  ;;  %v2118_v49 = vmul.f32 %v2108_v60, %v5810_v2  ;;  %v2139_v4 = vadd.f32 %v2129_v19, %v2113_v18  ;;  %v2138_v34 = vadd.f32 %v2129_v19, %v2112_v0  ;;  %v3257_v2 = vld [vmem:[%s6143_s5 + $0x10] sm:$0xff] }
 0x81d   :  { %v2121_v15 = vmul.f32 %v2108_v60, %v5834_v62  ;;  %v2120_v5 = vmul.f32 %v2108_v60, %v5831_v29  ;;  %v2141_v47 = vadd.f32 %v2129_v19, %v2115_v59  ;;  %v2140_v48 = vadd.f32 %v2129_v19, %v2114_v46  ;;  %v3258_v29 = vld [vmem:[%s6143_s5 + $0x18] sm:$0xff] }
 0x81e   :  { %v2134_v63 = vpop.permute.xlu1 %2133 }
 0x81f   :  { %v2143_v17 = vadd.f32 %v2134_v63, %v2117_v14  ;;  %v2142_v7 = vadd.f32 %v2134_v63, %v2116_v11  ;;  %v2145_v43 = vadd.f32 %v2134_v63, %v2119_v21  ;;  %v2144_v3 = vadd.f32 %v2134_v63, %v2118_v49 }
 0x820   :  { %v2147_v16 = vadd.f32 %v2134_v63, %v2121_v15  ;;  %v2146_v30 = vadd.f32 %v2134_v63, %v2120_v5  ;;  %v6313_v63 = vld [vmem:[#allocation39_spill] sm:$0xff]  ;;  %v6315_v5 = vld [vmem:[#allocation41_spill] sm:$0xff] }
 0x821   :  { %v2149_v51 = vadd.f32 %v2143_v17, %v2137_v24  ;;  %v2148_v50 = vadd.f32 %v2142_v7, %v2136_v33  ;;  %v2151_v13 = vadd.f32 %v2145_v43, %v2139_v4  ;;  %v2150_v36 = vadd.f32 %v2144_v3, %v2138_v34  ;;  %v6314_v34 = vld [vmem:[#allocation40_spill] sm:$0xff]  ;;  %v6316_v17 = vld [vmem:[#allocation42_spill] sm:$0xff]  ;;  %v6317_v7 = vld [vmem:[#allocation43_spill] sm:$0xff] }
 0x822   :  { %v2153_v26 = vadd.f32 %v2147_v16, %v2141_v47  ;;  %v2152_v62 = vadd.f32 %v2146_v30, %v2140_v48  ;;  %v6318_v43 = vld [vmem:[#allocation44_spill] sm:$0xff]  ;;  %v6319_v3 = vld [vmem:[#allocation45_spill] sm:$0xff] }
 0x823   :  { %2163 = vmatprep.subr.mxu1 %v2149_v51 }
 0x824   :  { %2164 = vmatpush1.msra.mxu1 %v2148_v50 }
 0x825   :  { %3259 = vmatmul.mubr.msk.f32.vlgmr.msra.gmra.mrb[50].mxu1 %vm1576_vm11, %v3257_v2  ;;  %2240 = vmatprep.subr.mxu1 %v2151_v13 }
 0x826   :  { %2241 = vmatpush1.msra.mxu1 %v2150_v36  ;;  %2233 = vmatprep.mubr.f32.mxu1 %v6274_v39 }
 0x827   :  { %2317 = vmatprep.subr.mxu1 %v2153_v26 }
 0x829   :  { %3260 = vmatmul.mubr.msk.f32.gmra.mrb[52].mxu1 %vm1576_vm11, %v3258_v29 }
 0x82a   :  { %2304 = vmatprep.mubr.f32.mxu1 %v6274_v39 }
 0x82d   :  { %3261 = vmatmul.mubr.msk.f32.vlgmr.msra.gmra.mrb[54].mxu1 %vm1576_vm11, %v3257_v2 }
 0x82e   :  { %2318 = vmatpush1.msra.mxu1 %v2152_v62  ;;  %2310 = vmatprep.mubr.f32.mxu1 %v6274_v39 }
 0x82f   :  { %4283 = vmatprep.subr.bf16.mxu1 %v6290_v61 }
 0x831   :  { %3262 = vmatmul.mubr.msk.f32.gmra.mrb[56].mxu1 %vm1576_vm11, %v3258_v29 }
 0x832   :  { %2381 = vmatprep.mubr.f32.mxu1 %v6274_v39 }
 0x835   :  { %3263 = vmatmul.mubr.msk.f32.vlgmr.msra.gmra.mrb[58].mxu1 %vm1576_vm11, %v3257_v2 }
 0x836   :  { %2387 = vmatprep.mubr.f32.mxu1 %v6274_v39  ;;  %4285 = vmatpush3.bf16.msra.mxu1 %v6291_v57 }
 0x837   :  { %4287 = vmatprep.subr.bf16.mxu1 %v6292_v52 }
 0x839   :  { %3264 = vmatmul.mubr.msk.f32.gmra.mrb[60].mxu1 %vm1576_vm11, %v3258_v29 }
 0x83a   :  { %4289 = vmatpush3.bf16.msra.mxu1 %v6293_v37 }
 0x83b   :  { %4291 = vmatprep.subr.bf16.mxu1 %v6294_v41 }
 0x83e   :  { %4293 = vmatpush3.bf16.msra.mxu1 %v6295_v31 }
 0x83f   :  { %4295 = vmatprep.subr.bf16.mxu1 %v6296_v35 }
 0x842   :  { %4297 = vmatpush3.bf16.msra.mxu1 %v6297_v58 }
 0x843   :  { %4299 = vmatprep.subr.bf16.mxu1 %v6298_v56 }
 0x846   :  { %4301 = vmatpush3.bf16.msra.mxu1 %v6299_v28 }
 0x847   :  { %4303 = vmatprep.subr.bf16.mxu1 %v6300_v9 }
 0x84a   :  { %4305 = vmatpush3.bf16.msra.mxu1 %v6301_v44 }
 0x84b   :  { %4307 = vmatprep.subr.bf16.mxu1 %v6302_v53 }
 0x84e   :  { %4309 = vmatpush3.bf16.msra.mxu1 %v6303_v23 }
 0x84f   :  { %4311 = vmatprep.subr.bf16.mxu1 %v6304_v20 }
 0x852   :  { %4313 = vmatpush3.bf16.msra.mxu1 %v6305_v12 }
 0x8f8   :  { %v5927_v25 = vpop.f32.mrb[50].mxu1 }
 0x8f9   :  { %v5929_v55 = vpop.f32.mrb[51].mxu1  ;;  %v2399_v42 = vmul.f32 %v5927_v25, %v5927_v25 }
 0x8fa   :  { %2475 = vmatprep.mubr.f32.mxu0 %v5929_v55  ;;  %v2400_v19 = vmul.f32 %v5929_v55, %v5929_v55 }
 0x8fb   :  { %2476 = vmatmul.mubr.f32.vlgmr.msra.gmra.mrb[58].mxu0 %v5927_v25 }
 0x8fc   :  { %4317 = vmatpush3.bf16.msra.mxu0 %v4891_v6  ;;  %v5934_v27 = vpop.f32.mrb[52].mxu1 }
 0x8fd   :  { %v5936_v8 = vpop.f32.mrb[53].mxu1  ;;  %4319 = vmatprep.subr.bf16.mxu0 %v4897_v10  ;;  %v2405_v0 = vmul.f32 %v5934_v27, %v5934_v27 }
 0x8fe   :  { %2480 = vmatprep.mubr.f32.mxu0 %v5936_v8  ;;  %v2406_v60 = vmul.f32 %v5936_v8, %v5936_v8 }
 0x8ff   :  { %2481 = vmatmul.mubr.f32.gmra.mrb[60].mxu0 %v5934_v27 }
 0x900   :  { %4321 = vmatpush3.bf16.msra.mxu0 %v4917_v22  ;;  %v5946_v38 = vpop.f32.mrb[54].mxu1  ;;  %2485 = vmatprep.mubr.f32.mxu0 %v2400_v19 }
 0x901   :  { %v5950_v18 = vpop.f32.mrb[55].mxu1  ;;  %4323 = vmatprep.subr.bf16.mxu0 %v4924_v32  ;;  %v2401_v46 = vmul.f32 %v5946_v38, %v5946_v38 }
 0x902   :  { %2560 = vmatprep.mubr.f32.mxu1 %v5950_v18  ;;  %v2402_v14 = vmul.f32 %v5950_v18, %v5950_v18 }
 0x903   :  { %2486 = vmatmul.mubr.f32.gmra.mrb[62].mxu0 %v2399_v42  ;;  %2561 = vmatmul.mubr.f32.vlgmr.msra.gmra.mrb[62].mxu1 %v5946_v38 }
 0x904   :  { %4325 = vmatpush3.bf16.msra.mxu0 %v6279_v1  ;;  %v5960_v24 = vpop.f32.mrb[56].mxu1  ;;  %2490 = vmatprep.mubr.f32.mxu0 %v2406_v60 }
 0x905   :  { %v5962_v59 = vpop.f32.mrb[57].mxu1  ;;  %4327 = vmatprep.subr.bf16.mxu0 %v6280_v54  ;;  %v2407_v49 = vmul.f32 %v5960_v24, %v5960_v24 }
 0x906   :  { %2565 = vmatprep.mubr.f32.mxu1 %v5962_v59  ;;  %v2408_v11 = vmul.f32 %v5962_v59, %v5962_v59 }
 0x907   :  { %2566 = vmatmul.mubr.f32.gmra.mrb[64].mxu1 %v5960_v24  ;;  %2491 = vmatmul.mubr.f32.gmra.mrb[64].mxu0 %v2405_v0 }
 0x908   :  { %4329 = vmatpush3.bf16.msra.mxu0 %v6281_v40  ;;  %2570 = vmatprep.mubr.f32.mxu1 %v2402_v14  ;;  %v5972_v33 = vpop.f32.mrb[58].mxu1 }
 0x909   :  { %4331 = vmatprep.subr.bf16.mxu0 %v6282_v45  ;;  %v5975_v21 = vpop.f32.mrb[59].mxu1  ;;  %v2403_v16 = vmul.f32 %v5972_v33, %v5972_v33 }
 0x90a   :  { %2645 = vmatprep.mubr.f32.mxu0 %v5975_v21  ;;  %v2404_v47 = vmul.f32 %v5975_v21, %v5975_v21 }
 0x90b   :  { %2571 = vmatmul.mubr.f32.gmra.mrb[66].mxu1 %v2401_v46 }
 0x90c   :  { %4333 = vmatpush3.bf16.msra.mxu0 %v6313_v63  ;;  %2575 = vmatprep.mubr.f32.mxu1 %v2408_v11  ;;  %v5981_v4 = vpop.f32.mrb[60].mxu1 }
 0x90d   :  { %4335 = vmatprep.subr.bf16.mxu0 %v6314_v34  ;;  %v5984_v15 = vpop.f32.mrb[61].mxu1 }
 0x90f   :  { %2576 = vmatmul.mubr.f32.gmra.mrb[68].mxu1 %v2407_v49 }
 0x910   :  { %4337 = vmatpush3.bf16.msra.mxu0 %v6315_v5  ;;  %2802 = vmatprep.mubr.f32.mxu1 %v6274_v39 }
 0x911   :  { %4339 = vmatprep.subr.bf16.mxu0 %v6316_v17 }
 0x914   :  { %4341 = vmatpush3.bf16.msra.mxu0 %v6317_v7 }
 0x915   :  { %4343 = vmatprep.subr.bf16.mxu0 %v6318_v43 }
 0x918   :  { %4345 = vmatpush3.bf16.msra.mxu0 %v6319_v3 }
 0x919   :  { %4379 = vmatprep.subr.bf16.mxu0 %v6290_v61  ;;  %v2410_v61 = vmul.f32 %v5984_v15, %v5984_v15 }
 0x91b   :  { %2646 = vmatmul.mubr.f32.vlgmr.msra.gmra.mrb[66].mxu0 %v5972_v33 }
 0x91c   :  { %2650 = vmatprep.mubr.f32.mxu0 %v5984_v15  ;;  %4381 = vmatpush3.bf16.msra.mxu0 %v6291_v57  ;;  %v2409_v57 = vmul.f32 %v5981_v4, %v5981_v4 }
 0x91d   :  { %4383 = vmatprep.subr.bf16.mxu0 %v6292_v52 }
 0x91f   :  { %2651 = vmatmul.mubr.f32.gmra.mrb[68].mxu0 %v5981_v4 }
 0x920   :  { %2655 = vmatprep.mubr.f32.mxu0 %v2404_v47  ;;  %4385 = vmatpush3.bf16.msra.mxu0 %v6293_v37 }
 0x921   :  { %4387 = vmatprep.subr.bf16.mxu0 %v6294_v41 }
 0x923   :  { %2656 = vmatmul.mubr.f32.gmra.mrb[70].mxu0 %v2403_v16 }
 0x924   :  { %2660 = vmatprep.mubr.f32.mxu0 %v2410_v61  ;;  %4389 = vmatpush3.bf16.msra.mxu0 %v6295_v31 }
 0x925   :  { %4391 = vmatprep.subr.bf16.mxu0 %v6296_v35 }
 0x927   :  { %2661 = vmatmul.mubr.f32.gmra.mrb[72].mxu0 %v2409_v57 }
 0x928   :  { %4393 = vmatpush3.bf16.msra.mxu0 %v6297_v58 }
 0x929   :  { %4395 = vmatprep.subr.bf16.mxu0 %v6298_v56 }
 0x92c   :  { %4397 = vmatpush3.bf16.msra.mxu0 %v6299_v28 }
 0x92d   :  { %4399 = vmatprep.subr.bf16.mxu0 %v6300_v9 }
 0x930   :  { %4401 = vmatpush3.bf16.msra.mxu0 %v6301_v44 }
 0x931   :  { %4403 = vmatprep.subr.bf16.mxu0 %v6302_v53 }
 0x934   :  { %4405 = vmatpush3.bf16.msra.mxu0 %v6303_v23 }
 0x935   :  { %4407 = vmatprep.subr.bf16.mxu0 %v6304_v20 }
 0x938   :  { %4409 = vmatpush3.bf16.msra.mxu0 %v6305_v12 }
 0x9ce   :  { %v3700_v52 = vpop.f32.mrb[58].mxu0 }
 0x9cf   :  { %v3701_v37 = vpop.f32.mrb[59].mxu0 }
 0x9d0   :  { %v3702_v41 = vadd.f32 %v3701_v37, %v3700_v52 }
 0x9d2   :  { %v3703_v31 = vpop.f32.mrb[60].mxu0 }
 0x9d3   :  { %v3704_v35 = vpop.f32.mrb[61].mxu0 }
 0x9d4   :  { %v3705_v58 = vadd.f32 %v3704_v35, %v3703_v31 }
 0x9d6   :  { %v3706_v56 = vpop.f32.mrb[62].mxu0  ;;  %v3744_v28 = vpop.f32.mrb[62].mxu1 }
 0x9d7   :  { %v3707_v48 = vpop.f32.mrb[63].mxu0  ;;  %v3745_v9 = vpop.f32.mrb[63].mxu1 }
 0x9d8   :  { %v3708_v30 = vadd.f32 %v3707_v48, %v3706_v56  ;;  %v3746_v44 = vadd.f32 %v3745_v9, %v3744_v28 }
 0x9da   :  { %v2563_v51 = vadd.f32 %v3746_v44, %v3702_v41  ;;  %v3747_v53 = vpop.f32.mrb[64].mxu1  ;;  %v3709_v50 = vpop.f32.mrb[64].mxu0 }
 0x9db   :  { %v3748_v23 = vpop.f32.mrb[65].mxu1  ;;  %v3710_v13 = vpop.f32.mrb[65].mxu0 }
 0x9dc   :  { %v3749_v20 = vadd.f32 %v3748_v23, %v3747_v53  ;;  %v3711_v36 = vadd.f32 %v3710_v13, %v3709_v50 }
 0x9de   :  { %v2568_v12 = vadd.f32 %v3749_v20, %v3705_v58  ;;  %v3750_v2 = vpop.f32.mrb[66].mxu1 }
 0x9df   :  { %v3751_v26 = vpop.f32.mrb[67].mxu1 }
 0x9e0   :  { %v3752_v62 = vadd.f32 %v3751_v26, %v3750_v2  ;;  %v3267_v26 = vld [vmem:[%s6140_s7 + $0x70] sm:$0xff] }
 0x9e2   :  { %v2573_v29 = vadd.f32 %v3752_v62, %v3708_v30  ;;  %v3753_v19 = vpop.f32.mrb[68].mxu1  ;;  %v3266_v62 = vld [vmem:[%s6140_s7 + $0x68] sm:$0xff] }
 0x9e3   :  { %v3754_v60 = vpop.f32.mrb[69].mxu1 }
 0x9e4   :  { %v3755_v42 = vadd.f32 %v3754_v60, %v3753_v19 }
 0x9e6   :  { %v2578_v0 = vadd.f32 %v3755_v42, %v3711_v36  ;;  %v3265_v36 = vld [vmem:[%s6140_s7 + $0x60] sm:$0xff] }
 0x9ee   :  { %v3788_v14 = vpop.f32.mrb[66].mxu0 }
 0x9ef   :  { %v3789_v46 = vpop.f32.mrb[67].mxu0 }
 0x9f0   :  { %v3790_v11 = vadd.f32 %v3789_v46, %v3788_v14 }
 0x9f2   :  { %v2648_v49 = vadd.f32 %v3790_v11, %v2563_v51  ;;  %v3791_v47 = vpop.f32.mrb[68].mxu0 }
 0x9f3   :  { %v3792_v16 = vpop.f32.mrb[69].mxu0 }
 0x9f4   :  { %v3793_v61 = vadd.f32 %v3792_v16, %v3791_v47  ;;  %v2666_v41 = vmul.f32 0.0015432099, %v2648_v49 }
 0x9f6   :  { %v2653_v57 = vadd.f32 %v3793_v61, %v2568_v12  ;;  %v3794_v52 = vpop.f32.mrb[70].mxu0  ;;  %v2670_v28 = vmul.f32 %v2666_v41, %v2666_v41 }
 0x9f7   :  { %v3795_v37 = vpop.f32.mrb[71].mxu0 }
 0x9f8   :  { %v3796_v31 = vadd.f32 %v3795_v37, %v3794_v52  ;;  %v2667_v48 = vmul.f32 0.0015432099, %v2653_v57 }
 0x9fa   :  { %v2658_v35 = vadd.f32 %v3796_v31, %v2573_v29  ;;  %v3797_v58 = vpop.f32.mrb[72].mxu0  ;;  %v2671_v50 = vmul.f32 %v2667_v48, %v2667_v48 }
 0x9fb   :  { %v3798_v56 = vpop.f32.mrb[73].mxu0 }
 0x9fc   :  { %v2668_v9 = vmul.f32 0.0015432099, %v2658_v35  ;;  %v3799_v30 = vadd.f32 %v3798_v56, %v3797_v58 }
 0x9fe   :  { %v2672_v44 = vsub.f32 %v2668_v9, %v2670_v28  ;;  %v2663_v53 = vadd.f32 %v3799_v30, %v2578_v0  ;;  %v3268_v0 = vld [vmem:[%s6140_s7 + $0x78] sm:$0xff] }
 0xa00   :  { %v2674_v23 = vadd.f32 1e-05, %v2672_v44  ;;  %v2669_v51 = vmul.f32 0.0015432099, %v2663_v53 }
 0xa02   :  { %4468 = vrsqrt.f32 %v2674_v23  ;;  %v2673_v13 = vsub.f32 %v2669_v51, %v2671_v50 }
 0xa04   :  { %v2675_v20 = vadd.f32 1e-05, %v2673_v13 }
 0xa06   :  { %4470 = vrsqrt.f32 %v2675_v20 }
 0xa0c   :  { %v4469_v12 = vpop.eup %4468 }
 0xa0d   :  { %v2678_v2 = vmul.f32 %v4469_v12, %v3265_v36  ;;  %v6321_v36 = vld [vmem:[#allocation3_spill] sm:$0xff]  ;;  %v6322_v12 = vld [vmem:[#allocation6_spill] sm:$0xff] }
 0xa0f   :  { %2682 = vperm.xlu0 %4454, %v2678_v2   ;;  %v2702_v29 = vmul.f32 %v2678_v2, %v2666_v41  ;;  %v6323_v2 = vld [vmem:[#allocation8_spill] sm:$0xff] }
 0xa10   :  { %v4471_v19 = vpop.eup %4470 }
 0xa11   :  { %v2704_v60 = vsub.f32 %v3267_v26, %v2702_v29  ;;  %v2679_v42 = vmul.f32 %v4471_v19, %v3266_v62  ;;  %v6324_v26 = vld [vmem:[#allocation10_spill] sm:$0xff]  ;;  %v6325_v62 = vld [vmem:[#allocation12_spill] sm:$0xff] }
 0xa12   :  { %v6326_v29 = vld [vmem:[#allocation14_spill] sm:$0xff]  ;;  %v6327_v19 = vld [vmem:[#allocation16_spill] sm:$0xff] }
 0xa13   :  { %2708 = vperm.xlu0 %4454, %v2704_v60   ;;  %2687 = vperm.xlu1 %4455, %v2679_v42   ;;  %v2703_v14 = vmul.f32 %v2679_v42, %v2667_v48  ;;  %v6328_v60 = vld [vmem:[#allocation18_spill] sm:$0xff] }
 0xa14   :  { %v6330_v42 = vld [vmem:[#allocation22_spill] sm:$0xff] }
 0xa15   :  { %v2705_v46 = vsub.f32 %v3268_v0, %v2703_v14  ;;  %v6331_v0 = vld [vmem:[#allocation24_spill] sm:$0xff]  ;;  %v6332_v14 = vld [vmem:[#allocation26_spill] sm:$0xff] }
 0xa17   :  { %2713 = vperm.xlu1 %4455, %v2705_v46   ;;  %v6333_v46 = vld [vmem:[#allocation28_spill] sm:$0xff] }
 0xa8e   :  { %v2683_v11 = vpop.permute.xlu0 %2682 }
 0xa8f   :  { %v2691_v16 = vmul.f32 %v2683_v11, %v5929_v55  ;;  %v2690_v61 = vmul.f32 %v2683_v11, %v5927_v25  ;;  %v2693_v57 = vmul.f32 %v2683_v11, %v5950_v18  ;;  %v2692_v52 = vmul.f32 %v2683_v11, %v5946_v38 }
 0xa90   :  { %v2695_v31 = vmul.f32 %v2683_v11, %v5975_v21  ;;  %v2694_v35 = vmul.f32 %v2683_v11, %v5972_v33  ;;  %v6334_v11 = vld [vmem:[#allocation29_spill] sm:$0xff] }
 0xa92   :  { %v2709_v49 = vpop.permute.xlu0 %2708  ;;  %v2688_v47 = vpop.permute.xlu1 %2687 }
 0xa93   :  { %v2697_v37 = vmul.f32 %v2688_v47, %v5936_v8  ;;  %v2717_v41 = vadd.f32 %v2709_v49, %v2691_v16  ;;  %v2696_v58 = vmul.f32 %v2688_v47, %v5934_v27  ;;  %v2716_v56 = vadd.f32 %v2709_v49, %v2690_v61 }
 0xa94   :  { %v2699_v28 = vmul.f32 %v2688_v47, %v5962_v59  ;;  %v2698_v55 = vmul.f32 %v2688_v47, %v5960_v24  ;;  %v2719_v25 = vadd.f32 %v2709_v49, %v2693_v57  ;;  %v2718_v9 = vadd.f32 %v2709_v49, %v2692_v52  ;;  %v2734_v24 = vld [vmem:[%s6144_s6] sm:$0xff] }
 0xa95   :  { %v2701_v18 = vmul.f32 %v2688_v47, %v5984_v15  ;;  %v2700_v38 = vmul.f32 %v2688_v47, %v5981_v4  ;;  %v2721_v53 = vadd.f32 %v2709_v49, %v2695_v31  ;;  %v2720_v50 = vadd.f32 %v2709_v49, %v2694_v35  ;;  %v6320_v4 = vld [vmem:[#allocation2_spill] sm:$0xff]  ;;  %v6336_v47 = vld [vmem:[#allocation32_spill] sm:$0xff] }
 0xa96   :  { %v2714_v48 = vpop.permute.xlu1 %2713  ;;  %v6335_v49 = vld [vmem:[#allocation30_spill] sm:$0xff] }
 0xa97   :  { %v2723_v8 = vadd.f32 %v2714_v48, %v2697_v37  ;;  %v2722_v30 = vadd.f32 %v2714_v48, %v2696_v58  ;;  %v2725_v44 = vadd.f32 %v2714_v48, %v2699_v28  ;;  %v2724_v21 = vadd.f32 %v2714_v48, %v2698_v55 }
 0xa98   :  { %v2727_v33 = vadd.f32 %v2714_v48, %v2701_v18  ;;  %v2726_v27 = vadd.f32 %v2714_v48, %v2700_v38 }
 0xa99   :  { %v2729_v23 = vadd.f32 %v2723_v8, %v2717_v41  ;;  %v2728_v51 = vadd.f32 %v2722_v30, %v2716_v56  ;;  %v2731_v59 = vadd.f32 %v2725_v44, %v2719_v25  ;;  %v2730_v13 = vadd.f32 %v2724_v21, %v2718_v9 }
 0xa9a   :  { %v2733_v20 = vadd.f32 %v2727_v33, %v2721_v53  ;;  %v2732_v15 = vadd.f32 %v2726_v27, %v2720_v50  ;;  %v2951_v27 = vld [vmem:[%s6145_s8] sm:$0xff] }
 0xa9b   :  { %2738 = vmatprep.subr.mxu1 %v2729_v23 }
 0xa9c   :  { %2739 = vmatpush1.msra.mxu1 %v2728_v51 }
 0xa9d   :  { %3269 = vmatmul.mubr.msk.f32.vlgmr.msra.gmra.mrb[70].mxu1 %vm1576_vm11, %v2734_v24  ;;  %2809 = vmatprep.subr.mxu1 %v2731_v59  ;;  %v2952_v59 = vld [vmem:[%s6145_s8 + $0x8] sm:$0xff] }
 0xa9e   :  { %2810 = vmatpush1.msra.mxu1 %v2730_v13  ;;  %2873 = vmatprep.mubr.f32.mxu1 %v6274_v39 }
 0xa9f   :  { %2880 = vmatprep.subr.mxu1 %v2733_v20 }
 0xaa1   :  { %3270 = vmatmul.mubr.msk.f32.vlgmr.msra.gmra.mrb[72].mxu1 %vm1576_vm11, %v2734_v24 }
 0xaa2   :  { %2881 = vmatpush1.msra.mxu1 %v2732_v15  ;;  %2944 = vmatprep.mubr.f32.mxu1 %v6274_v39  ;;  %v6329_v39 = vld [vmem:[#allocation20_spill] sm:$0xff] }
 0xaa3   :  { %4347 = vmatprep.subr.bf16.mxu1 %v6320_v4 }
 0xaa5   :  { %3271 = vmatmul.mubr.msk.f32.vlgmr.msra.gmra.mrb[74].mxu1 %vm1576_vm11, %v2734_v24 }
 0xaa6   :  { %4349 = vmatpush3.bf16.msra.mxu1 %v6321_v36 }
 0xaa7   :  { %4351 = vmatprep.subr.bf16.mxu1 %v6322_v12 }
 0xaaa   :  { %4353 = vmatpush3.bf16.msra.mxu1 %v6323_v2 }
 0xaab   :  { %4355 = vmatprep.subr.bf16.mxu1 %v6324_v26 }
 0xaae   :  { %4357 = vmatpush3.bf16.msra.mxu1 %v6325_v62 }
 0xaaf   :  { %4359 = vmatprep.subr.bf16.mxu1 %v6326_v29 }
 0xab2   :  { %4361 = vmatpush3.bf16.msra.mxu1 %v6327_v19 }
 0xab3   :  { %4363 = vmatprep.subr.bf16.mxu1 %v6328_v60 }
 0xab6   :  { %4365 = vmatpush3.bf16.msra.mxu1 %v6329_v39 }
 0xab7   :  { %4367 = vmatprep.subr.bf16.mxu1 %v6330_v42 }
 0xaba   :  { %4369 = vmatpush3.bf16.msra.mxu1 %v6331_v0 }
 0xabb   :  { %4371 = vmatprep.subr.bf16.mxu1 %v6332_v14 }
 0xabe   :  { %4373 = vmatpush3.bf16.msra.mxu1 %v6333_v46 }
 0xabf   :  { %4375 = vmatprep.subr.bf16.mxu1 %v6334_v11 }
 0xac2   :  { %4377 = vmatpush3.bf16.msra.mxu1 %v6335_v49 }
 0xac3   :  { %4411 = vmatprep.subr.bf16.mxu1 %v6336_v47 }
 0xb70   :  { %v6068_v16 = vpop.f32.mrb[70].mxu1 }
 0xb71   :  { %v6070_v61 = vpop.f32.mrb[71].mxu1  ;;  %v2953_v37 = vmul.f32 %v6068_v16, %v6068_v16 }
 0xb72   :  { %v2954_v57 = vmul.f32 %v6070_v61, %v6070_v61  ;;  %3023 = vmatprep.mubr.f32.mxu1 %v6070_v61 }
 0xb73   :  { %3024 = vmatmul.mubr.f32.vlgmr.msra.gmra.mrb[76].mxu1 %v6068_v16 }
 0xb74   :  { %4413 = vmatpush3.bf16.msra.mxu1 %v4891_v6  ;;  %v6077_v52 = vpop.f32.mrb[72].mxu1  ;;  %3028 = vmatprep.mubr.f32.mxu1 %v2954_v57 }
 0xb75   :  { %4415 = vmatprep.subr.bf16.mxu1 %v4897_v10  ;;  %v6082_v41 = vpop.f32.mrb[73].mxu1  ;;  %v2955_v35 = vmul.f32 %v6077_v52, %v6077_v52 }
 0xb76   :  { %v2956_v31 = vmul.f32 %v6082_v41, %v6082_v41  ;;  %3098 = vmatprep.mubr.f32.mxu0 %v6082_v41 }
 0xb77   :  { %3099 = vmatmul.mubr.f32.vlgmr.msra.gmra.mrb[74].mxu0 %v6077_v52  ;;  %3029 = vmatmul.mubr.f32.gmra.mrb[78].mxu1 %v2953_v37 }
 0xb78   :  { %4417 = vmatpush3.bf16.msra.mxu1 %v4917_v22  ;;  %3103 = vmatprep.mubr.f32.mxu0 %v2956_v31  ;;  %v6091_v6 = vpop.f32.mrb[74].mxu1 }
 0xb79   :  { %4419 = vmatprep.subr.bf16.mxu1 %v4924_v32  ;;  %v2948_v10 = vpop.f32.mrb[75].mxu1  ;;  %v2957_v32 = vmul.f32 %v6091_v6, %v6091_v6 }
 0xb7a   :  { %3173 = vmatprep.mubr.f32.mxu1 %v2948_v10  ;;  %v2958_v22 = vmul.f32 %v2948_v10, %v2948_v10 }
 0xb7b   :  { %3104 = vmatmul.mubr.f32.gmra.mrb[76].mxu0 %v2955_v35 }
 0xb7c   :  { %4421 = vmatpush3.bf16.msra.mxu1 %v6279_v1 }
 0xb7d   :  { %4423 = vmatprep.subr.bf16.mxu1 %v6280_v54 }
 0xb80   :  { %4425 = vmatpush3.bf16.msra.mxu1 %v6281_v40 }
 0xb81   :  { %4427 = vmatprep.subr.bf16.mxu1 %v6282_v45 }
 0xb84   :  { %4429 = vmatpush3.bf16.msra.mxu1 %v6313_v63 }
 0xb85   :  { %4431 = vmatprep.subr.bf16.mxu1 %v6314_v34 }
 0xb88   :  { %4433 = vmatpush3.bf16.msra.mxu1 %v6315_v5 }
 0xb89   :  { %4435 = vmatprep.subr.bf16.mxu1 %v6316_v17 }
 0xb8c   :  { %4437 = vmatpush3.bf16.msra.mxu1 %v6317_v7 }
 0xb8d   :  { %4439 = vmatprep.subr.bf16.mxu1 %v6318_v43 }
 0xb90   :  { %4441 = vmatpush3.bf16.msra.mxu1 %v6319_v3 }
 0xb93   :  { %3174 = vmatmul.mubr.f32.vlgmr.msra.gmra.mrb[80].mxu1 %v6091_v6 }
 0xb94   :  { %3178 = vmatprep.mubr.f32.mxu1 %v2958_v22 }
 0xb97   :  { %3179 = vmatmul.mubr.f32.gmra.mrb[82].mxu1 %v2957_v32 }
 0xc46   :  { %v3832_v1 = vpop.f32.mrb[76].mxu1 }
 0xc47   :  { %v3833_v54 = vpop.f32.mrb[77].mxu1 }
 0xc48   :  { %v3834_v40 = vadd.f32 %v3833_v54, %v3832_v1 }
 0xc4a   :  { %v3870_v45 = vpop.f32.mrb[74].mxu0  ;;  %v3835_v63 = vpop.f32.mrb[78].mxu1 }
 0xc4b   :  { %v3871_v34 = vpop.f32.mrb[75].mxu0  ;;  %v3836_v5 = vpop.f32.mrb[79].mxu1 }
 0xc4c   :  { %v3872_v17 = vadd.f32 %v3871_v34, %v3870_v45  ;;  %v3837_v7 = vadd.f32 %v3836_v5, %v3835_v63 }
 0xc4e   :  { %v3101_v43 = vadd.f32 %v3872_v17, %v3834_v40  ;;  %v3873_v58 = vpop.f32.mrb[76].mxu0 }
 0xc4f   :  { %v3874_v3 = vpop.f32.mrb[77].mxu0 }
 0xc50   :  { %v3875_v56 = vadd.f32 %v3874_v3, %v3873_v58 }
 0xc52   :  { %v3106_v28 = vadd.f32 %v3875_v56, %v3837_v7 }
 0xc66   :  { %v3908_v55 = vpop.f32.mrb[80].mxu1 }
 0xc67   :  { %v3909_v48 = vpop.f32.mrb[81].mxu1 }
 0xc68   :  { %v3910_v25 = vadd.f32 %v3909_v48, %v3908_v55 }
 0xc6a   :  { %v3176_v9 = vadd.f32 %v3910_v25, %v3101_v43  ;;  %v3911_v18 = vpop.f32.mrb[82].mxu1 }
 0xc6b   :  { %v3912_v38 = vpop.f32.mrb[83].mxu1 }
 0xc6c   :  { %v3184_v8 = vmul.f32 0.0015432099, %v3176_v9  ;;  %v3913_v30 = vadd.f32 %v3912_v38, %v3911_v18 }
 0xc6e   :  { %v3181_v44 = vadd.f32 %v3913_v30, %v3106_v28  ;;  %v3186_v21 = vmul.f32 %v3184_v8, %v3184_v8 }
 0xc70   :  { %v3185_v53 = vmul.f32 0.0015432099, %v3181_v44 }
 0xc72   :  { %v3187_v33 = vsub.f32 %v3185_v53, %v3186_v21 }
 0xc74   :  { %v3188_v50 = vadd.f32 1e-05, %v3187_v33 }
 0xc76   :  { %4472 = vrsqrt.f32 %v3188_v50 }
 0xc80   :  { %v4473_v23 = vpop.eup %4472 }
 0xc81   :  { %v3190_v51 = vmul.f32 %v4473_v23, %v2951_v27 }
 0xc83   :  { %3193 = vperm.xlu0 %4454, %v3190_v51   ;;  %v3202_v13 = vmul.f32 %v3190_v51, %v3184_v8 }
 0xc85   :  { %v3203_v24 = vsub.f32 %v2952_v59, %v3202_v13 }
 0xc87   :  { %3206 = vperm.xlu1 %4455, %v3203_v24  }
 0xd02   :  { %v3194_v20 = vpop.permute.xlu0 %3193 }
 0xd03   :  { %v3196_v15 = vmul.f32 %v3194_v20, %v6068_v16  ;;  %v3197_v4 = vmul.f32 %v3194_v20, %v6070_v61  ;;  %v3198_v36 = vmul.f32 %v3194_v20, %v6077_v52  ;;  %v3199_v12 = vmul.f32 %v3194_v20, %v6082_v41 }
 0xd04   :  { %v3200_v2 = vmul.f32 %v3194_v20, %v6091_v6  ;;  %v3201_v26 = vmul.f32 %v3194_v20, %v2948_v10 }
 0xd06   :  { %v3207_v62 = vpop.permute.xlu1 %3206 }
 0xd07   :  { %v3209_v29 = vadd.f32 %v3207_v62, %v3196_v15  ;;  %v3210_v19 = vadd.f32 %v3207_v62, %v3197_v4  ;;  %v3211_v60 = vadd.f32 %v3207_v62, %v3198_v36  ;;  %v3212_v39 = vadd.f32 %v3207_v62, %v3199_v12 }
 0xd08   :  { %v3213_v42 = vadd.f32 %v3207_v62, %v3200_v2  ;;  %v3214_v0 = vadd.f32 %v3207_v62, %v3201_v26 }
 0xd09   :  { %3215 = vst [vmem:[%s6146_s9] sm:$0xff] %v3209_v29  ;;  %3216 = vst [vmem:[%s6146_s9 + $0x8] sm:$0xff] %v3210_v19 }
 0xd0a   :  { %3217 = vst [vmem:[%s6146_s9 + $0x10] sm:$0xff] %v3211_v60  ;;  %3218 = vst [vmem:[%s6146_s9 + $0x18] sm:$0xff] %v3212_v39 }
 0xd0b   :  { %3219 = vst [vmem:[%s6146_s9 + $0x20] sm:$0xff] %v3213_v42  ;;  %3220 = vst [vmem:[%s6146_s9 + $0x28] sm:$0xff] %v3214_v0 }

</bundles_post_ra>
